<compile_context>
chip_gen: v7x
topology: tpu7x:2x2x1
jax: 0.10.0
libtpu: 0.0.40
codegen_flags: <defaults>
</compile_context>

<pallas_src>
import functools

import jax
import jax.numpy as jnp
from jax.experimental import pallas as pl
from jax.experimental.pallas import tpu as pltpu

_LANE = 128   # use 256 on v6e/v7x if the extra padding is cheap (2x256 MXU)


def _round_up(x, m):
    return ((x + m - 1) // m) * m


def _next_pow2(x):
    return 1 if x <= 1 else 1 << (int(x) - 1).bit_length()


# ---------------------------------------------------------------------------
# Pallas kernel: one grid step processes `bt` Captum perturbations.
# ---------------------------------------------------------------------------
def _gnn_block_kernel(em_ref, x_ref, dT_ref, s_ref, w1_ref, b1_ref, w2_ref,
                      b2_ref, o_ref, *, bt, n, out_row):
    """em_ref : (bt, Ep)      f32  raw per-edge masks (no sigmoid)
       x_ref  : (bt*n, F)     bf16 node-feature masks, batch-flattened
       dT_ref : (n, Ep)       bf16 destination one-hot^T (static per graph)
       s_ref  : (Ep, n)       bf16 source one-hot       (static per graph)
       w1_ref : (F, H)  bf16 / b1_ref (1, H)  f32
       w2_ref : (H, Cp) bf16 / b2_ref (1, Cp) f32   (lane-padded)
       o_ref  : (bt, Cp) f32 if out_row is fused, else (bt, n, Cp) f32
    """
    # Layer-1 feature transform for the whole block at once (wide sublane matmul).
    xw = jnp.dot(x_ref[...], w1_ref[...], preferred_element_type=jnp.float32)
    xw_bf = xw.astype(jnp.bfloat16)                       # (bt*n, H)
    dT = dT_ref[...]                                      # (n, Ep)  bf16
    S = s_ref[...]                                        # (Ep, n)  bf16
    b1 = b1_ref[...]                                      # (1, H)   f32
    w2 = w2_ref[...]                                      # (H, Cp)  bf16
    b2 = b2_ref[...]                                      # (1, Cp)  f32

    # Statically unrolled loop over the bt samples of this block (bt is small, so
    # the straight-line code stays fully visible to the LLO scheduler).
    for b in range(bt):
        em = em_ref[b:b + 1, :]                           # (1, Ep) f32

        # Masked adjacency on the MXU: a[i,j] = sum_e [dst_e==i] * em_e * [src_e==j].
        # Duplicate (dst, src) edges accumulate, matching PyG sum aggregation.
        a = jnp.dot((dT * em).astype(jnp.bfloat16), S,
                    preferred_element_type=jnp.float32)   # (n, n) f32
        a_bf = a.astype(jnp.bfloat16)

        # Layer 1: masked-sum aggregate, bias, relu.
        h = jnp.maximum(
            jnp.dot(a_bf, xw_bf[b * n:(b + 1) * n, :],
                    preferred_element_type=jnp.float32) + b1, 0.0)   # (n, H)

        # Layer 2, re-associated: aggregate first (rows, H), project last (rows, Cp).
        if out_row is None:
            a2 = a_bf                                                # (n, n)
        else:
            a2 = a[out_row:out_row + 1, :].astype(jnp.bfloat16)      # (1, n)
        agg2 = jnp.dot(a2, h.astype(jnp.bfloat16),
                       preferred_element_type=jnp.float32)           # (rows, H)
        out = jnp.dot(agg2.astype(jnp.bfloat16), w2,
                      preferred_element_type=jnp.float32) + b2       # (rows, Cp)

        if out_row is None:
            o_ref[b] = out.astype(o_ref.dtype)                       # (n, Cp)
        else:
            o_ref[b:b + 1, :] = out.astype(o_ref.dtype)              # (1, Cp), lane-dense


# ---------------------------------------------------------------------------
# Batched forward: B perturbations, bt per grid step, one pallas_call.
# ---------------------------------------------------------------------------
@functools.partial(jax.jit, static_argnames=("bt", "n_pad", "output_idx"))
def _captum_gnn_forward(em_p, x_flat, dT, S, w1, b1, w2p, b2p, *, bt, n_pad,
                        output_idx):
    Bpad, Ep = em_p.shape
    F = x_flat.shape[1]
    H = w1.shape[1]
    Cp = w2p.shape[1]
    n_blocks = Bpad // bt
    rows = 1 if output_idx is not None else n_pad

    if output_idx is not None:
        out_shape = jax.ShapeDtypeStruct((Bpad, Cp), jnp.float32)
        out_spec = pl.BlockSpec((bt, Cp), lambda i: (i, 0))
    else:
        out_shape = jax.ShapeDtypeStruct((Bpad, n_pad, Cp), jnp.float32)
        out_spec = pl.BlockSpec((bt, n_pad, Cp), lambda i: (i, 0, 0))

    flops = n_blocks * (2 * bt * n_pad * F * H
                        + bt * (2 * n_pad * Ep * n_pad
                                + 2 * n_pad * n_pad * H
                                + 2 * rows * n_pad * H
                                + 2 * rows * H * Cp))
    bytes_accessed = (4 * Bpad * Ep + 2 * Bpad * n_pad * F
                      + 2 * (2 * n_pad * Ep) + 2 * (F * H + H * Cp)
                      + 4 * (H + Cp) + 4 * Bpad * rows * Cp)

    return pl.pallas_call(
        functools.partial(_gnn_block_kernel, bt=bt, n=n_pad, out_row=output_idx),
        out_shape=out_shape,
        grid=(n_blocks,),
        in_specs=[
            pl.BlockSpec((bt, Ep), lambda i: (i, 0)),            # edge masks (per block)
            pl.BlockSpec((bt * n_pad, F), lambda i: (i, 0)),     # node feats (flattened)
            pl.BlockSpec((n_pad, Ep), lambda i: (0, 0)),         # dst one-hot^T (static)
            pl.BlockSpec((Ep, n_pad), lambda i: (0, 0)),         # src one-hot   (static)
            pl.BlockSpec((F, H), lambda i: (0, 0)),              # w1 (bf16)
            pl.BlockSpec((1, H), lambda i: (0, 0)),              # b1 (f32)
            pl.BlockSpec((H, Cp), lambda i: (0, 0)),             # w2 (bf16, lane-padded)
            pl.BlockSpec((1, Cp), lambda i: (0, 0)),             # b2 (f32, lane-padded)
        ],
        out_specs=out_spec,
        compiler_params=pltpu.CompilerParams(
            dimension_semantics=("parallel",)),                  # batch -> both TCs (v7x)
        cost_estimate=pl.CostEstimate(flops=flops, transcendentals=0,
                                      bytes_accessed=bytes_accessed),
    )(em_p, x_flat, dT, S, w1, b1, w2p, b2p)


# ---------------------------------------------------------------------------
# CaptumModel-equivalent wrapper (mask_type='node_and_edge', apply_sigmoid=False).
# ---------------------------------------------------------------------------
class CaptumModelJAX:
    def __init__(self, params, edge_index, num_nodes, output_idx=None, *,
                 block_batch=8, lane=_LANE):
        w1, b1, w2, b2 = params
        if output_idx is not None and not (0 <= int(output_idx) < int(num_nodes)):
            raise ValueError(f"output_idx {output_idx} out of range [0, {num_nodes})")
        self.num_nodes = int(num_nodes)
        self.num_edges = int(edge_index.shape[1])
        self.output_idx = None if output_idx is None else int(output_idx)
        self.bt = int(block_batch)
        self.C = int(w2.shape[1])

        # Padded sizes: nodes -> sublane multiple, edges/classes -> lane multiple.
        self.n_pad = _round_up(self.num_nodes, 8)
        self.e_pad = _round_up(self.num_edges, lane)
        self.c_pad = _round_up(self.C, lane)

        # Static-per-graph one-hot incidence matrices, built ONCE (hoisted out of the
        # jitted forward). Exact in bf16; padded edges map to no node (all-zero).
        src = jnp.asarray(edge_index[0], jnp.int32)
        dst = jnp.asarray(edge_index[1], jnp.int32)
        node_ids = jnp.arange(self.n_pad, dtype=jnp.int32)
        valid = jnp.arange(self.e_pad, dtype=jnp.int32) < self.num_edges
        src_p = jnp.where(valid, jnp.pad(src, (0, self.e_pad - self.num_edges)), -1)
        dst_p = jnp.where(valid, jnp.pad(dst, (0, self.e_pad - self.num_edges)), -1)
        self.dT = (dst_p[None, :] == node_ids[:, None]).astype(jnp.bfloat16)  # (Np, Ep)
        self.S = (src_p[:, None] == node_ids[None, :]).astype(jnp.bfloat16)   # (Ep, Np)

        # Parameters: bf16 MXU operands with f32 biases; lane-pad output projection.
        self.w1 = jnp.asarray(w1, jnp.bfloat16)
        self.b1 = jnp.asarray(b1, jnp.float32).reshape(1, -1)
        self.w2p = jnp.pad(jnp.asarray(w2, jnp.bfloat16),
                           ((0, 0), (0, self.c_pad - self.C)))
        self.b2p = jnp.pad(jnp.asarray(b2, jnp.float32).reshape(1, -1),
                           ((0, 0), (0, self.c_pad - self.C)))

    def _run(self, masks, edge_masks):
        """masks [B, N, F], edge_masks [B, E] -> [B, C] (fused) or [B, N, C]."""
        B = masks.shape[0]
        assert masks.shape[1] == self.num_nodes
        assert edge_masks.shape[1] == self.num_edges
        # Bucket the number of Bt-blocks to a power of two so a Captum attribution
        # loop with varying B hits only a handful of compiled shapes.
        n_blocks = _next_pow2(-(-B // self.bt))
        Bpad = n_blocks * self.bt

        x = jnp.asarray(masks, jnp.float32)
        em = jnp.asarray(edge_masks, jnp.float32)
        x_p = jnp.pad(x, ((0, Bpad - B), (0, self.n_pad - self.num_nodes), (0, 0)))
        em_p = jnp.pad(em, ((0, Bpad - B), (0, self.e_pad - self.num_edges)))
        x_flat = x_p.astype(jnp.bfloat16).reshape(Bpad * self.n_pad, -1)

        out = _captum_gnn_forward(em_p, x_flat, self.dT, self.S, self.w1, self.b1,
                                  self.w2p, self.b2p, bt=self.bt, n_pad=self.n_pad,
                                  output_idx=self.output_idx)
        if self.output_idx is not None:
            return out[:B, :self.C]                       # [B, C]
        return out[:B, :self.num_nodes, :self.C]          # [B, N, C]

    def __call__(self, mask, edge_mask, edge_index=None):
        # Original single-sample CaptumModel contract. `edge_index` (if given) is
        # ignored — the graph incidence is precomputed in the constructor.
        assert mask.shape[0] == 1, "Dimension 0 of input should be 1"
        assert edge_mask.shape[0] == 1, "Dimension 0 of input should be 1"
        out = self._run(mask, edge_mask)
        if self.output_idx is not None:
            return out                                    # x[output_idx].unsqueeze(0) -> [1, C]
        return out[0]                                     # full model output          -> [N, C]

    def attribute_batch(self, masks, edge_masks):
        """Batched Captum perturbations: masks [B, N, F], edge_masks [B, E]."""
        return self._run(masks, edge_masks)


# ---------------------------------------------------------------------------
# Pure-JAX reference (scatter-built adjacency) for correctness check.
# ---------------------------------------------------------------------------
def _reference(edge_mask, x, edge_index, params, num_nodes):
    w1, b1, w2, b2 = params
    src, dst = edge_index[0], edge_index[1]
    a = jnp.zeros((num_nodes, num_nodes), jnp.float32).at[dst, src].add(edge_mask)
    h = jnp.maximum(a @ (x @ w1) + b1, 0.0)
    return a @ (h @ w2) + b2


if __name__ == "__main__":
    key = jax.random.PRNGKey(0)
    kx, ke, kw1, kb1, kw2, kb2, kidx = jax.random.split(key, 7)

    N, F, H, C, E, B = 16, 8, 32, 8, 48, 4   # nodes, feats, hidden, classes, edges, batch

    w1 = jax.random.normal(kw1, (F, H), jnp.float32) * 0.1
    b1 = jax.random.normal(kb1, (1, H), jnp.float32) * 0.01
    w2 = jax.random.normal(kw2, (H, C), jnp.float32) * 0.1
    b2 = jax.random.normal(kb2, (1, C), jnp.float32) * 0.01
    params = (w1, b1, w2, b2)

    edge_index = jax.random.randint(kidx, (2, E), 0, N, jnp.int32)

    # Captum-style perturbation batch (node-feature masks act as x, raw edge masks).
    masks = jax.random.normal(kx, (B, N, F), jnp.float32)
    edge_masks = jax.random.uniform(ke, (B, E), jnp.float32)

    # bf16 MXU operands with f32 accumulation -> compare vs f32 reference at 3e-2.
    ATOL = RTOL = 3e-2

    model = CaptumModelJAX(params, edge_index, num_nodes=N, output_idx=3)

    # 1) Original single-sample CaptumModel contract ([1,N,F], [1,E] inputs).
    out1 = model(masks[:1], edge_masks[:1], edge_index)
    jax.block_until_ready(out1)
    ref1 = _reference(edge_masks[0], masks[0], edge_index, params, N)[3][None, :]
    assert out1.shape == (1, C), out1.shape
    assert jnp.allclose(out1, ref1, atol=ATOL, rtol=RTOL), (out1, ref1)

    # 2) Batched perturbations: bt samples per grid step, one pallas_call.
    outB = model.attribute_batch(masks, edge_masks)
    jax.block_until_ready(outB)
    assert outB.shape == (B, C), outB.shape
    for b in range(B):
        refb = _reference(edge_masks[b], masks[b], edge_index, params, N)[3]
        assert jnp.allclose(outB[b], refb, atol=ATOL, rtol=RTOL), b

    # 3) output_idx=None path (full node-level output).
    model_full = CaptumModelJAX(params, edge_index, num_nodes=N, output_idx=None)
    out_full = model_full(masks[:1], edge_masks[:1], edge_index)
    jax.block_until_ready(out_full)
    ref_full = _reference(edge_masks[0], masks[0], edge_index, params, N)
    assert out_full.shape == (N, C), out_full.shape
    assert jnp.allclose(out_full, ref_full, atol=ATOL, rtol=RTOL)

    print("KERNEL_OK")
</pallas_src>

<mosaic_0001>
module attributes {stable_mosaic.version = 11 : i64} {
  func.func @_gnn_block_kernel(%arg0: i32, %arg1: memref<8x128xf32, #tpu.memory_space<vmem>>, %arg2: memref<128x8xbf16, #tpu.memory_space<vmem>>, %arg3: memref<16x128xbf16, #tpu.memory_space<vmem>>, %arg4: memref<128x16xbf16, #tpu.memory_space<vmem>>, %arg5: memref<8x32xbf16, #tpu.memory_space<vmem>>, %arg6: memref<1x32xf32, #tpu.memory_space<vmem>>, %arg7: memref<32x128xbf16, #tpu.memory_space<vmem>>, %arg8: memref<1x128xf32, #tpu.memory_space<vmem>>, %arg9: memref<8x128xf32, #tpu.memory_space<vmem>>) attributes {dimension_semantics = [#tpu.dimension_semantics<parallel>], iteration_bounds = array<i64: 1>, scalar_prefetch = 0 : i64, scratch_operands = 0 : i64, tpu.core_type = #tpu.core_type<tc>, window_params = [{transform_indices = @transform_0, window_bounds = array<i64: 8, 128>}, {transform_indices = @transform_1, window_bounds = array<i64: 128, 8>}, {pipeline_mode = #tpu.pipeline_mode<synchronous>, transform_indices = @transform_2, window_bounds = array<i64: 16, 128>}, {pipeline_mode = #tpu.pipeline_mode<synchronous>, transform_indices = @transform_3, window_bounds = array<i64: 128, 16>}, {pipeline_mode = #tpu.pipeline_mode<synchronous>, transform_indices = @transform_4, window_bounds = array<i64: 8, 32>}, {pipeline_mode = #tpu.pipeline_mode<synchronous>, transform_indices = @transform_5, window_bounds = array<i64: 1, 32>}, {pipeline_mode = #tpu.pipeline_mode<synchronous>, transform_indices = @transform_6, window_bounds = array<i64: 32, 128>}, {pipeline_mode = #tpu.pipeline_mode<synchronous>, transform_indices = @transform_7, window_bounds = array<i64: 1, 128>}, {transform_indices = @transform_8, window_bounds = array<i64: 8, 128>}]} {
    %c0 = arith.constant 0 : index
    %c0_0 = arith.constant 0 : index
    %0 = vector.load %arg2[%c0, %c0_0] : memref<128x8xbf16, #tpu.memory_space<vmem>>, vector<128x8xbf16>
    %c0_1 = arith.constant 0 : index
    %c0_2 = arith.constant 0 : index
    %1 = vector.load %arg5[%c0_1, %c0_2] : memref<8x32xbf16, #tpu.memory_space<vmem>>, vector<8x32xbf16>
    %cst = arith.constant dense<0.000000e+00> : vector<128x32xf32>
    %2 = tpu.matmul %0, %1, %cst {dimension_numbers = #tpu.dot_dimension_numbers<[1], [0], [0], [1], [0, 0, 1, 1], [], []>} : vector<128x8xbf16>, vector<8x32xbf16>, vector<128x32xf32> -> vector<128x32xf32>
    %3 = arith.truncf %2 : vector<128x32xf32> to vector<128x32xbf16>
    %c0_3 = arith.constant 0 : index
    %c0_4 = arith.constant 0 : index
    %4 = vector.load %arg3[%c0_3, %c0_4] : memref<16x128xbf16, #tpu.memory_space<vmem>>, vector<16x128xbf16>
    %c0_5 = arith.constant 0 : index
    %c0_6 = arith.constant 0 : index
    %5 = vector.load %arg4[%c0_5, %c0_6] : memref<128x16xbf16, #tpu.memory_space<vmem>>, vector<128x16xbf16>
    %c0_7 = arith.constant 0 : index
    %c0_8 = arith.constant 0 : index
    %6 = vector.load %arg6[%c0_7, %c0_8] : memref<1x32xf32, #tpu.memory_space<vmem>>, vector<1x32xf32>
    %c0_9 = arith.constant 0 : index
    %c0_10 = arith.constant 0 : index
    %7 = vector.load %arg7[%c0_9, %c0_10] : memref<32x128xbf16, #tpu.memory_space<vmem>>, vector<32x128xbf16>
    %c0_11 = arith.constant 0 : index
    %c0_12 = arith.constant 0 : index
    %8 = vector.load %arg8[%c0_11, %c0_12] : memref<1x128xf32, #tpu.memory_space<vmem>>, vector<1x128xf32>
    %c0_13 = arith.constant 0 : index
    %c0_14 = arith.constant 0 : index
    %9 = vector.load %arg1[%c0_13, %c0_14] : memref<8x128xf32, #tpu.memory_space<vmem>>, vector<1x128xf32>
    %10 = arith.extf %4 : vector<16x128xbf16> to vector<16x128xf32>
    %11 = vector.broadcast %9 : vector<1x128xf32> to vector<16x128xf32>
    %12 = arith.mulf %10, %11 : vector<16x128xf32>
    %13 = arith.truncf %12 : vector<16x128xf32> to vector<16x128xbf16>
    %cst_15 = arith.constant dense<0.000000e+00> : vector<16x16xf32>
    %14 = tpu.matmul %13, %5, %cst_15 {dimension_numbers = #tpu.dot_dimension_numbers<[1], [0], [0], [1], [0, 0, 1, 1], [], []>} : vector<16x128xbf16>, vector<128x16xbf16>, vector<16x16xf32> -> vector<16x16xf32>
    %15 = arith.truncf %14 : vector<16x16xf32> to vector<16x16xbf16>
    %16 = vector.extract_strided_slice %3 {offsets = [0, 0], sizes = [16, 32], strides = [1, 1]} : vector<128x32xbf16> to vector<16x32xbf16>
    %cst_16 = arith.constant dense<0.000000e+00> : vector<16x32xf32>
    %17 = tpu.matmul %15, %16, %cst_16 {dimension_numbers = #tpu.dot_dimension_numbers<[1], [0], [0], [1], [0, 0, 1, 1], [], []>} : vector<16x16xbf16>, vector<16x32xbf16>, vector<16x32xf32> -> vector<16x32xf32>
    %18 = vector.broadcast %6 : vector<1x32xf32> to vector<16x32xf32>
    %19 = arith.addf %17, %18 : vector<16x32xf32>
    %cst_17 = arith.constant 0.000000e+00 : f32
    %20 = vector.broadcast %cst_17 : f32 to vector<16x32xf32>
    %21 = arith.maximumf %19, %20 : vector<16x32xf32>
    %22 = vector.extract_strided_slice %14 {offsets = [3, 0], sizes = [1, 16], strides = [1, 1]} : vector<16x16xf32> to vector<1x16xf32>
    %23 = arith.truncf %22 : vector<1x16xf32> to vector<1x16xbf16>
    %24 = arith.truncf %21 : vector<16x32xf32> to vector<16x32xbf16>
    %cst_18 = arith.constant dense<0.000000e+00> : vector<1x32xf32>
    %25 = tpu.matmul %23, %24, %cst_18 {dimension_numbers = #tpu.dot_dimension_numbers<[1], [0], [0], [1], [0, 0, 1, 1], [], []>} : vector<1x16xbf16>, vector<16x32xbf16>, vector<1x32xf32> -> vector<1x32xf32>
    %26 = arith.truncf %25 : vector<1x32xf32> to vector<1x32xbf16>
    %cst_19 = arith.constant dense<0.000000e+00> : vector<1x128xf32>
    %27 = tpu.matmul %26, %7, %cst_19 {dimension_numbers = #tpu.dot_dimension_numbers<[1], [0], [0], [1], [0, 0, 1, 1], [], []>} : vector<1x32xbf16>, vector<32x128xbf16>, vector<1x128xf32> -> vector<1x128xf32>
    %28 = arith.addf %27, %8 : vector<1x128xf32>
    %c0_20 = arith.constant 0 : index
    %c0_21 = arith.constant 0 : index
    %29 = vector.load %arg9[%c0_20, %c0_21] : memref<8x128xf32, #tpu.memory_space<vmem>>, vector<1x128xf32>
    tpu.vector_store %arg9[%c0_20, %c0_21], %28 {strides = array<i32>} : memref<8x128xf32, #tpu.memory_space<vmem>>, vector<1x128xf32>,
    %c1 = arith.constant 1 : index
    %c0_22 = arith.constant 0 : index
    %30 = vector.load %arg1[%c1, %c0_22] : memref<8x128xf32, #tpu.memory_space<vmem>>, vector<1x128xf32>
    %31 = arith.extf %4 : vector<16x128xbf16> to vector<16x128xf32>
    %32 = vector.broadcast %30 : vector<1x128xf32> to vector<16x128xf32>
    %33 = arith.mulf %31, %32 : vector<16x128xf32>
    %34 = arith.truncf %33 : vector<16x128xf32> to vector<16x128xbf16>
    %cst_23 = arith.constant dense<0.000000e+00> : vector<16x16xf32>
    %35 = tpu.matmul %34, %5, %cst_23 {dimension_numbers = #tpu.dot_dimension_numbers<[1], [0], [0], [1], [0, 0, 1, 1], [], []>} : vector<16x128xbf16>, vector<128x16xbf16>, vector<16x16xf32> -> vector<16x16xf32>
    %36 = arith.truncf %35 : vector<16x16xf32> to vector<16x16xbf16>
    %37 = vector.extract_strided_slice %3 {offsets = [16, 0], sizes = [16, 32], strides = [1, 1]} : vector<128x32xbf16> to vector<16x32xbf16>
    %cst_24 = arith.constant dense<0.000000e+00> : vector<16x32xf32>
    %38 = tpu.matmul %36, %37, %cst_24 {dimension_numbers = #tpu.dot_dimension_numbers<[1], [0], [0], [1], [0, 0, 1, 1], [], []>} : vector<16x16xbf16>, vector<16x32xbf16>, vector<16x32xf32> -> vector<16x32xf32>
    %39 = vector.broadcast %6 : vector<1x32xf32> to vector<16x32xf32>
    %40 = arith.addf %38, %39 : vector<16x32xf32>
    %cst_25 = arith.constant 0.000000e+00 : f32
    %41 = vector.broadcast %cst_25 : f32 to vector<16x32xf32>
    %42 = arith.maximumf %40, %41 : vector<16x32xf32>
    %43 = vector.extract_strided_slice %35 {offsets = [3, 0], sizes = [1, 16], strides = [1, 1]} : vector<16x16xf32> to vector<1x16xf32>
    %44 = arith.truncf %43 : vector<1x16xf32> to vector<1x16xbf16>
    %45 = arith.truncf %42 : vector<16x32xf32> to vector<16x32xbf16>
    %cst_26 = arith.constant dense<0.000000e+00> : vector<1x32xf32>
    %46 = tpu.matmul %44, %45, %cst_26 {dimension_numbers = #tpu.dot_dimension_numbers<[1], [0], [0], [1], [0, 0, 1, 1], [], []>} : vector<1x16xbf16>, vector<16x32xbf16>, vector<1x32xf32> -> vector<1x32xf32>
    %47 = arith.truncf %46 : vector<1x32xf32> to vector<1x32xbf16>
    %cst_27 = arith.constant dense<0.000000e+00> : vector<1x128xf32>
    %48 = tpu.matmul %47, %7, %cst_27 {dimension_numbers = #tpu.dot_dimension_numbers<[1], [0], [0], [1], [0, 0, 1, 1], [], []>} : vector<1x32xbf16>, vector<32x128xbf16>, vector<1x128xf32> -> vector<1x128xf32>
    %49 = arith.addf %48, %8 : vector<1x128xf32>
    %c1_28 = arith.constant 1 : index
    %c0_29 = arith.constant 0 : index
    %50 = vector.load %arg9[%c1_28, %c0_29] : memref<8x128xf32, #tpu.memory_space<vmem>>, vector<1x128xf32>
    tpu.vector_store %arg9[%c1_28, %c0_29], %49 {strides = array<i32>} : memref<8x128xf32, #tpu.memory_space<vmem>>, vector<1x128xf32>,
    %c2 = arith.constant 2 : index
    %c0_30 = arith.constant 0 : index
    %51 = vector.load %arg1[%c2, %c0_30] : memref<8x128xf32, #tpu.memory_space<vmem>>, vector<1x128xf32>
    %52 = arith.extf %4 : vector<16x128xbf16> to vector<16x128xf32>
    %53 = vector.broadcast %51 : vector<1x128xf32> to vector<16x128xf32>
    %54 = arith.mulf %52, %53 : vector<16x128xf32>
    %55 = arith.truncf %54 : vector<16x128xf32> to vector<16x128xbf16>
    %cst_31 = arith.constant dense<0.000000e+00> : vector<16x16xf32>
    %56 = tpu.matmul %55, %5, %cst_31 {dimension_numbers = #tpu.dot_dimension_numbers<[1], [0], [0], [1], [0, 0, 1, 1], [], []>} : vector<16x128xbf16>, vector<128x16xbf16>, vector<16x16xf32> -> vector<16x16xf32>
    %57 = arith.truncf %56 : vector<16x16xf32> to vector<16x16xbf16>
    %58 = vector.extract_strided_slice %3 {offsets = [32, 0], sizes = [16, 32], strides = [1, 1]} : vector<128x32xbf16> to vector<16x32xbf16>
    %cst_32 = arith.constant dense<0.000000e+00> : vector<16x32xf32>
    %59 = tpu.matmul %57, %58, %cst_32 {dimension_numbers = #tpu.dot_dimension_numbers<[1], [0], [0], [1], [0, 0, 1, 1], [], []>} : vector<16x16xbf16>, vector<16x32xbf16>, vector<16x32xf32> -> vector<16x32xf32>
    %60 = vector.broadcast %6 : vector<1x32xf32> to vector<16x32xf32>
    %61 = arith.addf %59, %60 : vector<16x32xf32>
    %cst_33 = arith.constant 0.000000e+00 : f32
    %62 = vector.broadcast %cst_33 : f32 to vector<16x32xf32>
    %63 = arith.maximumf %61, %62 : vector<16x32xf32>
    %64 = vector.extract_strided_slice %56 {offsets = [3, 0], sizes = [1, 16], strides = [1, 1]} : vector<16x16xf32> to vector<1x16xf32>
    %65 = arith.truncf %64 : vector<1x16xf32> to vector<1x16xbf16>
    %66 = arith.truncf %63 : vector<16x32xf32> to vector<16x32xbf16>
    %cst_34 = arith.constant dense<0.000000e+00> : vector<1x32xf32>
    %67 = tpu.matmul %65, %66, %cst_34 {dimension_numbers = #tpu.dot_dimension_numbers<[1], [0], [0], [1], [0, 0, 1, 1], [], []>} : vector<1x16xbf16>, vector<16x32xbf16>, vector<1x32xf32> -> vector<1x32xf32>
    %68 = arith.truncf %67 : vector<1x32xf32> to vector<1x32xbf16>
    %cst_35 = arith.constant dense<0.000000e+00> : vector<1x128xf32>
    %69 = tpu.matmul %68, %7, %cst_35 {dimension_numbers = #tpu.dot_dimension_numbers<[1], [0], [0], [1], [0, 0, 1, 1], [], []>} : vector<1x32xbf16>, vector<32x128xbf16>, vector<1x128xf32> -> vector<1x128xf32>
    %70 = arith.addf %69, %8 : vector<1x128xf32>
    %c2_36 = arith.constant 2 : index
    %c0_37 = arith.constant 0 : index
    %71 = vector.load %arg9[%c2_36, %c0_37] : memref<8x128xf32, #tpu.memory_space<vmem>>, vector<1x128xf32>
    tpu.vector_store %arg9[%c2_36, %c0_37], %70 {strides = array<i32>} : memref<8x128xf32, #tpu.memory_space<vmem>>, vector<1x128xf32>,
    %c3 = arith.constant 3 : index
    %c0_38 = arith.constant 0 : index
    %72 = vector.load %arg1[%c3, %c0_38] : memref<8x128xf32, #tpu.memory_space<vmem>>, vector<1x128xf32>
    %73 = arith.extf %4 : vector<16x128xbf16> to vector<16x128xf32>
    %74 = vector.broadcast %72 : vector<1x128xf32> to vector<16x128xf32>
    %75 = arith.mulf %73, %74 : vector<16x128xf32>
    %76 = arith.truncf %75 : vector<16x128xf32> to vector<16x128xbf16>
    %cst_39 = arith.constant dense<0.000000e+00> : vector<16x16xf32>
    %77 = tpu.matmul %76, %5, %cst_39 {dimension_numbers = #tpu.dot_dimension_numbers<[1], [0], [0], [1], [0, 0, 1, 1], [], []>} : vector<16x128xbf16>, vector<128x16xbf16>, vector<16x16xf32> -> vector<16x16xf32>
    %78 = arith.truncf %77 : vector<16x16xf32> to vector<16x16xbf16>
    %79 = vector.extract_strided_slice %3 {offsets = [48, 0], sizes = [16, 32], strides = [1, 1]} : vector<128x32xbf16> to vector<16x32xbf16>
    %cst_40 = arith.constant dense<0.000000e+00> : vector<16x32xf32>
    %80 = tpu.matmul %78, %79, %cst_40 {dimension_numbers = #tpu.dot_dimension_numbers<[1], [0], [0], [1], [0, 0, 1, 1], [], []>} : vector<16x16xbf16>, vector<16x32xbf16>, vector<16x32xf32> -> vector<16x32xf32>
    %81 = vector.broadcast %6 : vector<1x32xf32> to vector<16x32xf32>
    %82 = arith.addf %80, %81 : vector<16x32xf32>
    %cst_41 = arith.constant 0.000000e+00 : f32
    %83 = vector.broadcast %cst_41 : f32 to vector<16x32xf32>
    %84 = arith.maximumf %82, %83 : vector<16x32xf32>
    %85 = vector.extract_strided_slice %77 {offsets = [3, 0], sizes = [1, 16], strides = [1, 1]} : vector<16x16xf32> to vector<1x16xf32>
    %86 = arith.truncf %85 : vector<1x16xf32> to vector<1x16xbf16>
    %87 = arith.truncf %84 : vector<16x32xf32> to vector<16x32xbf16>
    %cst_42 = arith.constant dense<0.000000e+00> : vector<1x32xf32>
    %88 = tpu.matmul %86, %87, %cst_42 {dimension_numbers = #tpu.dot_dimension_numbers<[1], [0], [0], [1], [0, 0, 1, 1], [], []>} : vector<1x16xbf16>, vector<16x32xbf16>, vector<1x32xf32> -> vector<1x32xf32>
    %89 = arith.truncf %88 : vector<1x32xf32> to vector<1x32xbf16>
    %cst_43 = arith.constant dense<0.000000e+00> : vector<1x128xf32>
    %90 = tpu.matmul %89, %7, %cst_43 {dimension_numbers = #tpu.dot_dimension_numbers<[1], [0], [0], [1], [0, 0, 1, 1], [], []>} : vector<1x32xbf16>, vector<32x128xbf16>, vector<1x128xf32> -> vector<1x128xf32>
    %91 = arith.addf %90, %8 : vector<1x128xf32>
    %c3_44 = arith.constant 3 : index
    %c0_45 = arith.constant 0 : index
    %92 = vector.load %arg9[%c3_44, %c0_45] : memref<8x128xf32, #tpu.memory_space<vmem>>, vector<1x128xf32>
    tpu.vector_store %arg9[%c3_44, %c0_45], %91 {strides = array<i32>} : memref<8x128xf32, #tpu.memory_space<vmem>>, vector<1x128xf32>,
    %c4 = arith.constant 4 : index
    %c0_46 = arith.constant 0 : index
    %93 = vector.load %arg1[%c4, %c0_46] : memref<8x128xf32, #tpu.memory_space<vmem>>, vector<1x128xf32>
    %94 = arith.extf %4 : vector<16x128xbf16> to vector<16x128xf32>
    %95 = vector.broadcast %93 : vector<1x128xf32> to vector<16x128xf32>
    %96 = arith.mulf %94, %95 : vector<16x128xf32>
    %97 = arith.truncf %96 : vector<16x128xf32> to vector<16x128xbf16>
    %cst_47 = arith.constant dense<0.000000e+00> : vector<16x16xf32>
    %98 = tpu.matmul %97, %5, %cst_47 {dimension_numbers = #tpu.dot_dimension_numbers<[1], [0], [0], [1], [0, 0, 1, 1], [], []>} : vector<16x128xbf16>, vector<128x16xbf16>, vector<16x16xf32> -> vector<16x16xf32>
    %99 = arith.truncf %98 : vector<16x16xf32> to vector<16x16xbf16>
    %100 = vector.extract_strided_slice %3 {offsets = [64, 0], sizes = [16, 32], strides = [1, 1]} : vector<128x32xbf16> to vector<16x32xbf16>
    %cst_48 = arith.constant dense<0.000000e+00> : vector<16x32xf32>
    %101 = tpu.matmul %99, %100, %cst_48 {dimension_numbers = #tpu.dot_dimension_numbers<[1], [0], [0], [1], [0, 0, 1, 1], [], []>} : vector<16x16xbf16>, vector<16x32xbf16>, vector<16x32xf32> -> vector<16x32xf32>
    %102 = vector.broadcast %6 : vector<1x32xf32> to vector<16x32xf32>
    %103 = arith.addf %101, %102 : vector<16x32xf32>
    %cst_49 = arith.constant 0.000000e+00 : f32
    %104 = vector.broadcast %cst_49 : f32 to vector<16x32xf32>
    %105 = arith.maximumf %103, %104 : vector<16x32xf32>
    %106 = vector.extract_strided_slice %98 {offsets = [3, 0], sizes = [1, 16], strides = [1, 1]} : vector<16x16xf32> to vector<1x16xf32>
    %107 = arith.truncf %106 : vector<1x16xf32> to vector<1x16xbf16>
    %108 = arith.truncf %105 : vector<16x32xf32> to vector<16x32xbf16>
    %cst_50 = arith.constant dense<0.000000e+00> : vector<1x32xf32>
    %109 = tpu.matmul %107, %108, %cst_50 {dimension_numbers = #tpu.dot_dimension_numbers<[1], [0], [0], [1], [0, 0, 1, 1], [], []>} : vector<1x16xbf16>, vector<16x32xbf16>, vector<1x32xf32> -> vector<1x32xf32>
    %110 = arith.truncf %109 : vector<1x32xf32> to vector<1x32xbf16>
    %cst_51 = arith.constant dense<0.000000e+00> : vector<1x128xf32>
    %111 = tpu.matmul %110, %7, %cst_51 {dimension_numbers = #tpu.dot_dimension_numbers<[1], [0], [0], [1], [0, 0, 1, 1], [], []>} : vector<1x32xbf16>, vector<32x128xbf16>, vector<1x128xf32> -> vector<1x128xf32>
    %112 = arith.addf %111, %8 : vector<1x128xf32>
    %c4_52 = arith.constant 4 : index
    %c0_53 = arith.constant 0 : index
    %113 = vector.load %arg9[%c4_52, %c0_53] : memref<8x128xf32, #tpu.memory_space<vmem>>, vector<1x128xf32>
    tpu.vector_store %arg9[%c4_52, %c0_53], %112 {strides = array<i32>} : memref<8x128xf32, #tpu.memory_space<vmem>>, vector<1x128xf32>,
    %c5 = arith.constant 5 : index
    %c0_54 = arith.constant 0 : index
    %114 = vector.load %arg1[%c5, %c0_54] : memref<8x128xf32, #tpu.memory_space<vmem>>, vector<1x128xf32>
    %115 = arith.extf %4 : vector<16x128xbf16> to vector<16x128xf32>
    %116 = vector.broadcast %114 : vector<1x128xf32> to vector<16x128xf32>
    %117 = arith.mulf %115, %116 : vector<16x128xf32>
    %118 = arith.truncf %117 : vector<16x128xf32> to vector<16x128xbf16>
    %cst_55 = arith.constant dense<0.000000e+00> : vector<16x16xf32>
    %119 = tpu.matmul %118, %5, %cst_55 {dimension_numbers = #tpu.dot_dimension_numbers<[1], [0], [0], [1], [0, 0, 1, 1], [], []>} : vector<16x128xbf16>, vector<128x16xbf16>, vector<16x16xf32> -> vector<16x16xf32>
    %120 = arith.truncf %119 : vector<16x16xf32> to vector<16x16xbf16>
    %121 = vector.extract_strided_slice %3 {offsets = [80, 0], sizes = [16, 32], strides = [1, 1]} : vector<128x32xbf16> to vector<16x32xbf16>
    %cst_56 = arith.constant dense<0.000000e+00> : vector<16x32xf32>
    %122 = tpu.matmul %120, %121, %cst_56 {dimension_numbers = #tpu.dot_dimension_numbers<[1], [0], [0], [1], [0, 0, 1, 1], [], []>} : vector<16x16xbf16>, vector<16x32xbf16>, vector<16x32xf32> -> vector<16x32xf32>
    %123 = vector.broadcast %6 : vector<1x32xf32> to vector<16x32xf32>
    %124 = arith.addf %122, %123 : vector<16x32xf32>
    %cst_57 = arith.constant 0.000000e+00 : f32
    %125 = vector.broadcast %cst_57 : f32 to vector<16x32xf32>
    %126 = arith.maximumf %124, %125 : vector<16x32xf32>
    %127 = vector.extract_strided_slice %119 {offsets = [3, 0], sizes = [1, 16], strides = [1, 1]} : vector<16x16xf32> to vector<1x16xf32>
    %128 = arith.truncf %127 : vector<1x16xf32> to vector<1x16xbf16>
    %129 = arith.truncf %126 : vector<16x32xf32> to vector<16x32xbf16>
    %cst_58 = arith.constant dense<0.000000e+00> : vector<1x32xf32>
    %130 = tpu.matmul %128, %129, %cst_58 {dimension_numbers = #tpu.dot_dimension_numbers<[1], [0], [0], [1], [0, 0, 1, 1], [], []>} : vector<1x16xbf16>, vector<16x32xbf16>, vector<1x32xf32> -> vector<1x32xf32>
    %131 = arith.truncf %130 : vector<1x32xf32> to vector<1x32xbf16>
    %cst_59 = arith.constant dense<0.000000e+00> : vector<1x128xf32>
    %132 = tpu.matmul %131, %7, %cst_59 {dimension_numbers = #tpu.dot_dimension_numbers<[1], [0], [0], [1], [0, 0, 1, 1], [], []>} : vector<1x32xbf16>, vector<32x128xbf16>, vector<1x128xf32> -> vector<1x128xf32>
    %133 = arith.addf %132, %8 : vector<1x128xf32>
    %c5_60 = arith.constant 5 : index
    %c0_61 = arith.constant 0 : index
    %134 = vector.load %arg9[%c5_60, %c0_61] : memref<8x128xf32, #tpu.memory_space<vmem>>, vector<1x128xf32>
    tpu.vector_store %arg9[%c5_60, %c0_61], %133 {strides = array<i32>} : memref<8x128xf32, #tpu.memory_space<vmem>>, vector<1x128xf32>,
    %c6 = arith.constant 6 : index
    %c0_62 = arith.constant 0 : index
    %135 = vector.load %arg1[%c6, %c0_62] : memref<8x128xf32, #tpu.memory_space<vmem>>, vector<1x128xf32>
    %136 = arith.extf %4 : vector<16x128xbf16> to vector<16x128xf32>
    %137 = vector.broadcast %135 : vector<1x128xf32> to vector<16x128xf32>
    %138 = arith.mulf %136, %137 : vector<16x128xf32>
    %139 = arith.truncf %138 : vector<16x128xf32> to vector<16x128xbf16>
    %cst_63 = arith.constant dense<0.000000e+00> : vector<16x16xf32>
    %140 = tpu.matmul %139, %5, %cst_63 {dimension_numbers = #tpu.dot_dimension_numbers<[1], [0], [0], [1], [0, 0, 1, 1], [], []>} : vector<16x128xbf16>, vector<128x16xbf16>, vector<16x16xf32> -> vector<16x16xf32>
    %141 = arith.truncf %140 : vector<16x16xf32> to vector<16x16xbf16>
    %142 = vector.extract_strided_slice %3 {offsets = [96, 0], sizes = [16, 32], strides = [1, 1]} : vector<128x32xbf16> to vector<16x32xbf16>
    %cst_64 = arith.constant dense<0.000000e+00> : vector<16x32xf32>
    %143 = tpu.matmul %141, %142, %cst_64 {dimension_numbers = #tpu.dot_dimension_numbers<[1], [0], [0], [1], [0, 0, 1, 1], [], []>} : vector<16x16xbf16>, vector<16x32xbf16>, vector<16x32xf32> -> vector<16x32xf32>
    %144 = vector.broadcast %6 : vector<1x32xf32> to vector<16x32xf32>
    %145 = arith.addf %143, %144 : vector<16x32xf32>
    %cst_65 = arith.constant 0.000000e+00 : f32
    %146 = vector.broadcast %cst_65 : f32 to vector<16x32xf32>
    %147 = arith.maximumf %145, %146 : vector<16x32xf32>
    %148 = vector.extract_strided_slice %140 {offsets = [3, 0], sizes = [1, 16], strides = [1, 1]} : vector<16x16xf32> to vector<1x16xf32>
    %149 = arith.truncf %148 : vector<1x16xf32> to vector<1x16xbf16>
    %150 = arith.truncf %147 : vector<16x32xf32> to vector<16x32xbf16>
    %cst_66 = arith.constant dense<0.000000e+00> : vector<1x32xf32>
    %151 = tpu.matmul %149, %150, %cst_66 {dimension_numbers = #tpu.dot_dimension_numbers<[1], [0], [0], [1], [0, 0, 1, 1], [], []>} : vector<1x16xbf16>, vector<16x32xbf16>, vector<1x32xf32> -> vector<1x32xf32>
    %152 = arith.truncf %151 : vector<1x32xf32> to vector<1x32xbf16>
    %cst_67 = arith.constant dense<0.000000e+00> : vector<1x128xf32>
    %153 = tpu.matmul %152, %7, %cst_67 {dimension_numbers = #tpu.dot_dimension_numbers<[1], [0], [0], [1], [0, 0, 1, 1], [], []>} : vector<1x32xbf16>, vector<32x128xbf16>, vector<1x128xf32> -> vector<1x128xf32>
    %154 = arith.addf %153, %8 : vector<1x128xf32>
    %c6_68 = arith.constant 6 : index
    %c0_69 = arith.constant 0 : index
    %155 = vector.load %arg9[%c6_68, %c0_69] : memref<8x128xf32, #tpu.memory_space<vmem>>, vector<1x128xf32>
    tpu.vector_store %arg9[%c6_68, %c0_69], %154 {strides = array<i32>} : memref<8x128xf32, #tpu.memory_space<vmem>>, vector<1x128xf32>,
    %c7 = arith.constant 7 : index
    %c0_70 = arith.constant 0 : index
    %156 = vector.load %arg1[%c7, %c0_70] : memref<8x128xf32, #tpu.memory_space<vmem>>, vector<1x128xf32>
    %157 = arith.extf %4 : vector<16x128xbf16> to vector<16x128xf32>
    %158 = vector.broadcast %156 : vector<1x128xf32> to vector<16x128xf32>
    %159 = arith.mulf %157, %158 : vector<16x128xf32>
    %160 = arith.truncf %159 : vector<16x128xf32> to vector<16x128xbf16>
    %cst_71 = arith.constant dense<0.000000e+00> : vector<16x16xf32>
    %161 = tpu.matmul %160, %5, %cst_71 {dimension_numbers = #tpu.dot_dimension_numbers<[1], [0], [0], [1], [0, 0, 1, 1], [], []>} : vector<16x128xbf16>, vector<128x16xbf16>, vector<16x16xf32> -> vector<16x16xf32>
    %162 = arith.truncf %161 : vector<16x16xf32> to vector<16x16xbf16>
    %163 = vector.extract_strided_slice %3 {offsets = [112, 0], sizes = [16, 32], strides = [1, 1]} : vector<128x32xbf16> to vector<16x32xbf16>
    %cst_72 = arith.constant dense<0.000000e+00> : vector<16x32xf32>
    %164 = tpu.matmul %162, %163, %cst_72 {dimension_numbers = #tpu.dot_dimension_numbers<[1], [0], [0], [1], [0, 0, 1, 1], [], []>} : vector<16x16xbf16>, vector<16x32xbf16>, vector<16x32xf32> -> vector<16x32xf32>
    %165 = vector.broadcast %6 : vector<1x32xf32> to vector<16x32xf32>
    %166 = arith.addf %164, %165 : vector<16x32xf32>
    %cst_73 = arith.constant 0.000000e+00 : f32
    %167 = vector.broadcast %cst_73 : f32 to vector<16x32xf32>
    %168 = arith.maximumf %166, %167 : vector<16x32xf32>
    %169 = vector.extract_strided_slice %161 {offsets = [3, 0], sizes = [1, 16], strides = [1, 1]} : vector<16x16xf32> to vector<1x16xf32>
    %170 = arith.truncf %169 : vector<1x16xf32> to vector<1x16xbf16>
    %171 = arith.truncf %168 : vector<16x32xf32> to vector<16x32xbf16>
    %cst_74 = arith.constant dense<0.000000e+00> : vector<1x32xf32>
    %172 = tpu.matmul %170, %171, %cst_74 {dimension_numbers = #tpu.dot_dimension_numbers<[1], [0], [0], [1], [0, 0, 1, 1], [], []>} : vector<1x16xbf16>, vector<16x32xbf16>, vector<1x32xf32> -> vector<1x32xf32>
    %173 = arith.truncf %172 : vector<1x32xf32> to vector<1x32xbf16>
    %cst_75 = arith.constant dense<0.000000e+00> : vector<1x128xf32>
    %174 = tpu.matmul %173, %7, %cst_75 {dimension_numbers = #tpu.dot_dimension_numbers<[1], [0], [0], [1], [0, 0, 1, 1], [], []>} : vector<1x32xbf16>, vector<32x128xbf16>, vector<1x128xf32> -> vector<1x128xf32>
    %175 = arith.addf %174, %8 : vector<1x128xf32>
    %c7_76 = arith.constant 7 : index
    %c0_77 = arith.constant 0 : index
    %176 = vector.load %arg9[%c7_76, %c0_77] : memref<8x128xf32, #tpu.memory_space<vmem>>, vector<1x128xf32>
    tpu.vector_store %arg9[%c7_76, %c0_77], %175 {strides = array<i32>} : memref<8x128xf32, #tpu.memory_space<vmem>>, vector<1x128xf32>,
    return
  }
  func.func @transform_0(%arg0: i32) -> (i32, i32) {
    %c0_i32 = arith.constant 0 : i32
    %c0_i32_0 = arith.constant 0 : i32
    return %arg0, %c0_i32 : i32, i32
  }
  func.func @transform_1(%arg0: i32) -> (i32, i32) {
    %c0_i32 = arith.constant 0 : i32
    %c0_i32_0 = arith.constant 0 : i32
    return %arg0, %c0_i32 : i32, i32
  }
  func.func @transform_2(%arg0: i32) -> (i32, i32) {
    %c0_i32 = arith.constant 0 : i32
    %c0_i32_0 = arith.constant 0 : i32
    %c0_i32_1 = arith.constant 0 : i32
    return %c0_i32, %c0_i32_0 : i32, i32
  }
  func.func @transform_3(%arg0: i32) -> (i32, i32) {
    %c0_i32 = arith.constant 0 : i32
    %c0_i32_0 = arith.constant 0 : i32
    %c0_i32_1 = arith.constant 0 : i32
    return %c0_i32, %c0_i32_0 : i32, i32
  }
  func.func @transform_4(%arg0: i32) -> (i32, i32) {
    %c0_i32 = arith.constant 0 : i32
    %c0_i32_0 = arith.constant 0 : i32
    %c0_i32_1 = arith.constant 0 : i32
    return %c0_i32, %c0_i32_0 : i32, i32
  }
  func.func @transform_5(%arg0: i32) -> (i32, i32) {
    %c0_i32 = arith.constant 0 : i32
    %c0_i32_0 = arith.constant 0 : i32
    %c0_i32_1 = arith.constant 0 : i32
    return %c0_i32, %c0_i32_0 : i32, i32
  }
  func.func @transform_6(%arg0: i32) -> (i32, i32) {
    %c0_i32 = arith.constant 0 : i32
    %c0_i32_0 = arith.constant 0 : i32
    %c0_i32_1 = arith.constant 0 : i32
    return %c0_i32, %c0_i32_0 : i32, i32
  }
  func.func @transform_7(%arg0: i32) -> (i32, i32) {
    %c0_i32 = arith.constant 0 : i32
    %c0_i32_0 = arith.constant 0 : i32
    %c0_i32_1 = arith.constant 0 : i32
    return %c0_i32, %c0_i32_0 : i32, i32
  }
  func.func @transform_8(%arg0: i32) -> (i32, i32) {
    %c0_i32 = arith.constant 0 : i32
    %c0_i32_0 = arith.constant 0 : i32
    return %arg0, %c0_i32 : i32, i32
  }
}

</mosaic_0001>

<bundles_post_ra>
// kernel: _captum_gnn_forward.1
= control target key start
LH: loop header
LB: loop body
LE: loop exit
PB: predicated region body
PF: predicated region fallthrough
CT: control target
= control target key end

     0   :  { %vm113_vm0 = vcmask 1043456   ;;  %v2438_v2 = vmov 0.0   ;;  %vm88_vm1 = vcmask 64512   ;;  %vm2439_vm2 = vmmov 0   ;;  %s2990_s0 = inlined_call_operand.vmem [shape: f32[8,128], index: 0, kind: input, shape index: {}]   ;;  %s2991_s1 = inlined_call_operand.vmem [shape: bf16[128,8], index: 1, kind: input, shape index: {}]   ;;  %s2992_s2 = inlined_call_operand.vmem [shape: bf16[16,128], index: 2, kind: input, shape index: {}]   ;;  %s2993_s3 = inlined_call_operand.vmem [shape: bf16[128,16], index: 3, kind: input, shape index: {}]   ;;  %s2994_s4 = inlined_call_operand.vmem [shape: bf16[8,32], index: 4, kind: input, shape index: {}]   ;;  %s2995_s5 = inlined_call_operand.vmem [shape: f32[1,32], index: 5, kind: input, shape index: {}]   ;;  %s2996_s6 = inlined_call_operand.vmem [shape: bf16[32,128], index: 6, kind: input, shape index: {}]   ;;  %s2997_s7 = inlined_call_operand.vmem [shape: f32[1,128], index: 7, kind: input, shape index: {}]   ;;  %s2998_s8 = inlined_call_operand.hbm [shape: f32[8,128], index: 8, kind: output, shape index: {}]  }
   0x1   :  { %v47_v0 = vld [vmem:[%s2994_s4] sm:$0xf]  ;;  %2068 = vmatprep.subr.bf16.mxu1 %v2438_v2  ;;  %v2394_v5 = vld [vmem:[%s2991_s1 + $0x8] sm:$0xff]   ;;  %2084 = vmatprep.mubr.msk.bf16.mxu1 %vm2439_vm2, %v2438_v2  ;;  %v2517_v7 = vld [vmem:[%s2993_s3 + $0x10] sm:$0xff]  }
   0x2   :  { %2388 = vmatprep.subr.msk.bf16.mxu0 %vm113_vm0, %v47_v0  ;;  %v115_v1 = vsel %vm113_vm0, %v47_v0, 0  ;;  %v2493_v3 = vld [vmem:[%s2993_s3] sm:$0xff]   ;;  %v2508_v6 = vld [vmem:[%s2993_s3 + $0x8] sm:$0xff]   ;;  %v2524_v8 = vld [vmem:[%s2993_s3 + $0x18] sm:$0xff]  }
   0x3   :  { %2051 = vmatpush3.bf16.msra.mxu0 %v115_v1  ;;  %v2393_v4 = vld [vmem:[%s2991_s1] sm:$0xff]   ;;  %2069 = vmatpush3.bf16.msra.mxu1 %v2493_v3 }
   0x4   :  { %2088 = vmatprep.subr.bf16.mxu0 %v2438_v2  ;;  %2052 = vmatprep.mubr.msk.bf16.mxu0 %vm88_vm1, %v2393_v4  ;;  %v2530_v9 = vld [vmem:[%s2993_s3 + $0x20] sm:$0xff]  }
   0x5   :  { %2070 = vmatprep.subr.bf16.mxu1 %v2438_v2 }
   0x6   :  { %2053 = vmatmul.mubr.msk.bf16.vlgmr.msra.gmra.mrb[0].mxu0 %vm88_vm1, %v2394_v5 }
   0x7   :  { %2071 = vmatpush3.bf16.msra.mxu1 %v2508_v6 }
   0x8   :  { %2072 = vmatprep.subr.bf16.mxu1 %v2438_v2 }
   0xb   :  { %2073 = vmatpush3.bf16.msra.mxu1 %v2517_v7 }
   0xc   :  { %2074 = vmatprep.subr.bf16.mxu1 %v2438_v2 }
   0xf   :  { %2075 = vmatpush3.bf16.msra.mxu1 %v2524_v8 }
  0x10   :  { %2076 = vmatprep.subr.bf16.mxu1 %v2438_v2 }
  0x11   :  { %13 = vsyncpa [#allocation3], 0  ;;  %v2538_v10 = vld [vmem:[%s2993_s3 + $0x28] sm:$0xff]   ;;  %v1910_v11 = vld [vmem:[%s2992_s2] sm:$0xff]   ;;  %vm352_vm3 = vcmask 130048   ;;  %vm461_vm4 = vcmask 261120  }
  0x12   :  { %v2544_v12 = vunpack.c.l.bf16 %v1910_v11  ;;  %v2546_v13 = vunpack.c.h.bf16 %v1910_v11  ;;  %v2552_v14 = vld [vmem:[%s2993_s3 + $0x30] sm:$0xff]   ;;  %v1866_v15 = vld [vmem:[%s2990_s0] ss:$0 sm:$0xff]  ;;  %v2564_v18 = vld [vmem:[%s2993_s3 + $0x38] sm:$0xff]  }
  0x13   :  { %2077 = vmatpush3.bf16.msra.mxu1 %v2530_v9  ;;  %v2402_v20 = vld [vmem:[%s2991_s1 + $0x10] sm:$0xff]   ;;  %v2403_v21 = vld [vmem:[%s2991_s1 + $0x18] sm:$0xff]   ;;  %v2404_v22 = vld [vmem:[%s2991_s1 + $0x20] sm:$0xff]  }
  0x14   :  { %2078 = vmatprep.subr.bf16.mxu1 %v2438_v2  ;;  %v253_v16 = vmul.f32 %v2544_v12, %v1866_v15  ;;  %v254_v17 = vmul.f32 %v2546_v13, %v1866_v15  ;;  %2056 = vmatprep.mubr.msk.bf16.mxu0 %vm88_vm1, %v2402_v20  ;;  %v2405_v23 = vld [vmem:[%s2991_s1 + $0x28] sm:$0xff]   ;;  %v2406_v24 = vld [vmem:[%s2991_s1 + $0x30] sm:$0xff]   ;;  %v2407_v25 = vld [vmem:[%s2991_s1 + $0x38] sm:$0xff]  }
  0x15   :  { %2057 = vmatmul.mubr.msk.bf16.gmra.mrb[4].mxu0 %vm88_vm1, %v2403_v21  ;;  %v2640_v55 = vld [vmem:[%s2996_s6] sm:$0xff]   ;;  %v2646_v56 = vld [vmem:[%s2996_s6 + $0x8] sm:$0xff]  }
  0x16   :  { %v255_v19 = vpack.c.bf16 %v254_v17, %v253_v16  ;;  %2060 = vmatprep.mubr.msk.bf16.mxu0 %vm88_vm1, %v2404_v22  ;;  %v2654_v57 = vld [vmem:[%s2995_s5] ss:$0 sm:$0xff]  ;;  %v1881_v16 = vld [vmem:[%s2990_s0 + $0x1] ss:$0 sm:$0xff] }
  0x17   :  { %2079 = vmatpush3.bf16.msra.mxu1 %v2538_v10  ;;  %v511_v17 = vmul.f32 %v2544_v12, %v1881_v16 }
  0x18   :  { %2080 = vmatprep.subr.bf16.mxu1 %v2438_v2 }
  0x1b   :  { %2081 = vmatpush3.bf16.msra.mxu1 %v2552_v14 }
  0x1c   :  { %2082 = vmatprep.subr.bf16.mxu1 %v2438_v2 }
  0x1d   :  { %2061 = vmatmul.mubr.msk.bf16.gmra.mrb[8].mxu0 %vm88_vm1, %v2405_v23 }
  0x1e   :  { %2064 = vmatprep.mubr.msk.bf16.mxu0 %vm88_vm1, %v2406_v24 }
  0x1f   :  { %2083 = vmatpush3.bf16.msra.mxu1 %v2564_v18 }
  0x20   :  { %2094 = vmatprep.subr.bf16.mxu1 %v2438_v2 }
  0x22   :  { %2085 = vmatmul.mubr.bf16.vlgmr.msra.gmra.mrb[0].mxu1 %v255_v19  ;;  %v512_v19 = vmul.f32 %v2546_v13, %v1881_v16 }
  0x23   :  { %2096 = vmatprep.mubr.msk.bf16.mxu1 %vm2439_vm2, %v2438_v2 }
  0x24   :  { %v513_v20 = vpack.c.bf16 %v512_v19, %v511_v17  ;;  %v1885_v19 = vld [vmem:[%s2990_s0 + $0x2] ss:$0 sm:$0xff] }
  0x25   :  { %2065 = vmatmul.mubr.msk.bf16.gmra.mrb[12].mxu0 %vm88_vm1, %v2407_v25 }
  0x26   :  { %2090 = vmatprep.mubr.msk.bf16.mxu0 %vm2439_vm2, %v2438_v2 }
  0xd9   :  { %v2597_v26 = vpop.f32.mrb[0].mxu0 }
  0xda   :  { %v151_v27 = vpop.f32.mrb[1].mxu0 }
  0xdb   :  { %v2599_v28 = vpop.f32.mrb[2].mxu0 }
  0xdc   :  { %v215_v29 = vpack.c.bf16 %v2599_v28, %v2597_v26  ;;  %v154_v30 = vpop.f32.mrb[3].mxu0  ;;  %v2699_v26 = vld [vmem:[%s2997_s7] sm:$0x1] }
  0xdd   :  { %v214_v31 = vpack.c.bf16 %v154_v30, %v151_v27 }
  0xdf   :  { %2089 = vmatpush3.bf16.msra.mxu0 %v214_v31 }
  0xe0   :  { %2100 = vmatprep.subr.bf16.mxu0 %v2438_v2 }
  0xe8   :  { %v2607_v37 = vpop.f32.mrb[4].mxu0 }
  0xe9   :  { %v167_v38 = vpop.f32.mrb[5].mxu0 }
  0xea   :  { %v2609_v39 = vpop.f32.mrb[6].mxu0 }
  0xeb   :  { %v217_v40 = vpack.c.bf16 %v2609_v39, %v2607_v37  ;;  %v170_v41 = vpop.f32.mrb[7].mxu0 }
  0xec   :  { %v216_v42 = vpack.c.bf16 %v170_v41, %v167_v38 }
  0xf0   :  { %v2613_v43 = vpop.f32.mrb[8].mxu0 }
  0xf1   :  { %v2615_v44 = vpop.f32.mrb[9].mxu0 }
  0xf2   :  { %v2617_v45 = vpop.f32.mrb[10].mxu0 }
  0xf3   :  { %v219_v46 = vpack.c.bf16 %v2617_v45, %v2613_v43  ;;  %v2621_v47 = vpop.f32.mrb[11].mxu0 }
  0xf4   :  { %v218_v48 = vpack.c.bf16 %v2621_v47, %v2615_v44 }
  0xf5   :  { %v338_v32 = vpop.f32.mrb[0].mxu1 }
  0xf6   :  { %v2086_v33 = vpop.f32.mrb[1].mxu1  ;;  %v399_v61 = vpack.c.bf16 %v338_v32, %v338_v32 }
  0xf7   :  { %v341_v34 = vpop.f32.mrb[2].mxu1 }
  0xf8   :  { %v345_v35 = vpack.c.bf16 %v341_v34, %v338_v32  ;;  %v2087_v36 = vpop.f32.mrb[3].mxu1  ;;  %v2625_v49 = vpop.f32.mrb[12].mxu0  ;;  %v402_v5 = vshrl.u32 %v399_v61, 16 }
  0xf9   :  { %v2627_v50 = vpop.f32.mrb[13].mxu0 }
  0xfa   :  { %2091 = vmatmul.mubr.msk.bf16.vlgmr.msra.gmra.mrb[16].mxu0 %vm352_vm3, %v345_v35  ;;  %v2629_v51 = vpop.f32.mrb[14].mxu0  ;;  %v404_v15 = vrot.slane %v402_v5, 1 }
  0xfb   :  { %2104 = vmatprep.mubr.msk.bf16.mxu0 %vm2439_vm2, %v2438_v2  ;;  %v221_v52 = vpack.c.bf16 %v2629_v51, %v2625_v49  ;;  %v2633_v53 = vpop.f32.mrb[15].mxu0  ;;  %2101 = vmatpush3.bf16.msra.mxu0 %v2640_v55 }
  0xfc   :  { %v220_v54 = vpack.c.bf16 %v2633_v53, %v2627_v50  ;;  %2102 = vmatprep.subr.bf16.mxu0 %v2438_v2 }
  0xff   :  { %2103 = vmatpush3.bf16.msra.mxu0 %v2646_v56 }
 0x100   :  { %2128 = vmatprep.subr.bf16.mxu0 %v2438_v2 }
 0x1cd   :  { %v390_v58 = vpop.f32.mrb[16].mxu0 }
 0x1ce   :  { %v391_v59 = vadd.f32 %v2654_v57, %v390_v58  ;;  %v2092_v60 = vpop.f32.mrb[17].mxu0 }
 0x1cf   :  { %v393_v62 = vpop.f32.mrb[18].mxu0 }
 0x1d0   :  { %v394_v63 = vadd.f32 %v2654_v57, %v393_v62  ;;  %v2093_v0 = vpop.f32.mrb[19].mxu0  ;;  %v397_v1 = vmax.f32 %v391_v59, 0.0 }
 0x1d2   :  { %v398_v4 = vmax.f32 %v394_v63, 0.0 }
 0x1d4   :  { %v400_v11 = vpack.c.bf16 %v398_v4, %v397_v1 }
 0x1d6   :  { %2095 = vmatpush3.bf16.msra.mxu1 %v400_v11 }
 0x1d7   :  { %2108 = vmatprep.subr.bf16.mxu1 %v2438_v2 }
 0x1d9   :  { %2097 = vmatmul.mubr.msk.bf16.vlgmr.msra.gmra.mrb[4].mxu1 %vm352_vm3, %v404_v15 }
 0x1da   :  { %2109 = vmatpush3.bf16.msra.mxu1 %v2493_v3  ;;  %2124 = vmatprep.mubr.msk.bf16.mxu1 %vm2439_vm2, %v2438_v2 }
 0x1db   :  { %2110 = vmatprep.subr.bf16.mxu1 %v2438_v2 }
 0x1de   :  { %2111 = vmatpush3.bf16.msra.mxu1 %v2508_v6 }
 0x1df   :  { %2112 = vmatprep.subr.bf16.mxu1 %v2438_v2 }
 0x1e2   :  { %2113 = vmatpush3.bf16.msra.mxu1 %v2517_v7 }
 0x1e3   :  { %2114 = vmatprep.subr.bf16.mxu1 %v2438_v2 }
 0x1e6   :  { %2115 = vmatpush3.bf16.msra.mxu1 %v2524_v8 }
 0x1e7   :  { %2116 = vmatprep.subr.bf16.mxu1 %v2438_v2 }
 0x1ea   :  { %2117 = vmatpush3.bf16.msra.mxu1 %v2530_v9 }
 0x1eb   :  { %2118 = vmatprep.subr.bf16.mxu1 %v2438_v2 }
 0x1ee   :  { %2119 = vmatpush3.bf16.msra.mxu1 %v2538_v10 }
 0x1ef   :  { %2120 = vmatprep.subr.bf16.mxu1 %v2438_v2 }
 0x1f2   :  { %2121 = vmatpush3.bf16.msra.mxu1 %v2552_v14 }
 0x1f3   :  { %2122 = vmatprep.subr.bf16.mxu1 %v2438_v2 }
 0x1f6   :  { %2123 = vmatpush3.bf16.msra.mxu1 %v2564_v18 }
 0x1f7   :  { %2168 = vmatprep.subr.bf16.mxu1 %v2438_v2 }
 0x1f9   :  { %2125 = vmatmul.mubr.bf16.vlgmr.msra.gmra.mrb[8].mxu1 %v513_v20  ;;  %v701_v20 = vmul.f32 %v2544_v12, %v1885_v19 }
 0x1fa   :  { %2169 = vmatpush3.bf16.msra.mxu1 %v216_v42  ;;  %2170 = vmatprep.mubr.msk.bf16.mxu1 %vm2439_vm2, %v2438_v2 }
 0x1fb   :  { %2174 = vmatprep.subr.bf16.mxu1 %v2438_v2 }
 0x2ac   :  { %v442_v21 = vpop.f32.mrb[4].mxu1 }
 0x2ad   :  { %v448_v22 = vpack.c.bf16 %v442_v21, %v442_v21  ;;  %v2098_v23 = vpop.f32.mrb[5].mxu1  ;;  %v702_v21 = vmul.f32 %v2546_v13, %v1885_v19 }
 0x2ae   :  { %v445_v24 = vpop.f32.mrb[6].mxu1 }
 0x2af   :  { %v2099_v25 = vpop.f32.mrb[7].mxu1  ;;  %2105 = vmatmul.mubr.msk.bf16.vlgmr.msra.gmra.mrb[20].mxu0 %vm461_vm4, %v448_v22  ;;  %v703_v22 = vpack.c.bf16 %v702_v21, %v701_v20 }
 0x2b0   :  { %2129 = vmatpush3.bf16.msra.mxu0 %v215_v29  ;;  %2130 = vmatprep.mubr.msk.bf16.mxu0 %vm2439_vm2, %v2438_v2 }
 0x2b1   :  { %2134 = vmatprep.subr.bf16.mxu0 %v2438_v2 }
 0x2cc   :  { %v548_v27 = vpop.f32.mrb[8].mxu1 }
 0x2cd   :  { %v2126_v30 = vpop.f32.mrb[9].mxu1  ;;  %v602_v58 = vpack.c.bf16 %v548_v27, %v548_v27 }
 0x2ce   :  { %v551_v31 = vpop.f32.mrb[10].mxu1 }
 0x2cf   :  { %v555_v32 = vpack.c.bf16 %v551_v31, %v548_v27  ;;  %v2127_v33 = vpop.f32.mrb[11].mxu1  ;;  %v605_v0 = vshrl.u32 %v602_v58, 16 }
 0x2d1   :  { %2131 = vmatmul.mubr.msk.bf16.vlgmr.msra.gmra.mrb[24].mxu0 %vm352_vm3, %v555_v32  ;;  %v607_v4 = vrot.slane %v605_v0, 1 }
 0x2d2   :  { %2136 = vmatprep.mubr.msk.bf16.mxu0 %vm2439_vm2, %v2438_v2 }
 0x382   :  { %v499_v28 = vpop.f32.mrb[20].mxu0 }
 0x383   :  { %v500_v29 = vadd.f32 %v499_v28, %v2699_v26  ;;  %v2106_v34 = vpop.f32.mrb[21].mxu0 }
 0x384   :  { %v502_v35 = vpop.f32.mrb[22].mxu0 }
 0x385   :  { %505 = vst [vmem:[#allocation2] sm:$0x1] %v500_v29  ;;  %v2107_v36 = vpop.f32.mrb[23].mxu0 }
 0x3a4   :  { %v593_v38 = vpop.f32.mrb[24].mxu0 }
 0x3a5   :  { %v594_v41 = vadd.f32 %v2654_v57, %v593_v38  ;;  %v2132_v42 = vpop.f32.mrb[25].mxu0 }
 0x3a6   :  { %v596_v59 = vpop.f32.mrb[26].mxu0 }
 0x3a7   :  { %v597_v60 = vadd.f32 %v2654_v57, %v596_v59  ;;  %v2133_v61 = vpop.f32.mrb[27].mxu0  ;;  %v600_v62 = vmax.f32 %v594_v41, 0.0 }
 0x3a9   :  { %v601_v63 = vmax.f32 %v597_v60, 0.0 }
 0x3ab   :  { %v603_v1 = vpack.c.bf16 %v601_v63, %v600_v62 }
 0x3ad   :  { %2135 = vmatpush3.bf16.msra.mxu0 %v603_v1 }
 0x3ae   :  { %2140 = vmatprep.subr.bf16.mxu0 %v2438_v2 }
 0x3b0   :  { %2137 = vmatmul.mubr.msk.bf16.vlgmr.msra.gmra.mrb[28].mxu0 %vm352_vm3, %v607_v4  ;;  %v1889_v4 = vld [vmem:[%s2990_s0 + $0x3] ss:$0 sm:$0xff] }
 0x3b1   :  { %2141 = vmatpush3.bf16.msra.mxu0 %v2640_v55  ;;  %2144 = vmatprep.mubr.msk.bf16.mxu0 %vm2439_vm2, %v2438_v2 }
 0x3b2   :  { %2142 = vmatprep.subr.bf16.mxu0 %v2438_v2 }
 0x3b5   :  { %2143 = vmatpush3.bf16.msra.mxu0 %v2646_v56 }
 0x3b6   :  { %2148 = vmatprep.subr.bf16.mxu0 %v2438_v2 }
 0x483   :  { %v645_v5 = vpop.f32.mrb[28].mxu0 }
 0x484   :  { %v651_v11 = vpack.c.bf16 %v645_v5, %v645_v5  ;;  %v2138_v15 = vpop.f32.mrb[29].mxu0  ;;  %v891_v5 = vmul.f32 %v2544_v12, %v1889_v4 }
 0x485   :  { %v648_v16 = vpop.f32.mrb[30].mxu0 }
 0x486   :  { %v2139_v17 = vpop.f32.mrb[31].mxu0  ;;  %2145 = vmatmul.mubr.msk.bf16.vlgmr.msra.gmra.mrb[32].mxu0 %vm461_vm4, %v651_v11  ;;  %v892_v11 = vmul.f32 %v2546_v13, %v1889_v4 }
 0x487   :  { %2149 = vmatpush3.bf16.msra.mxu0 %v2493_v3  ;;  %2164 = vmatprep.mubr.msk.bf16.mxu0 %vm2439_vm2, %v2438_v2 }
 0x488   :  { %2150 = vmatprep.subr.bf16.mxu0 %v2438_v2  ;;  %v893_v15 = vpack.c.bf16 %v892_v11, %v891_v5 }
 0x48b   :  { %2151 = vmatpush3.bf16.msra.mxu0 %v2508_v6 }
 0x48c   :  { %2152 = vmatprep.subr.bf16.mxu0 %v2438_v2 }
 0x48f   :  { %2153 = vmatpush3.bf16.msra.mxu0 %v2517_v7 }
 0x490   :  { %2154 = vmatprep.subr.bf16.mxu0 %v2438_v2 }
 0x493   :  { %2155 = vmatpush3.bf16.msra.mxu0 %v2524_v8 }
 0x494   :  { %2156 = vmatprep.subr.bf16.mxu0 %v2438_v2 }
 0x497   :  { %2157 = vmatpush3.bf16.msra.mxu0 %v2530_v9 }
 0x498   :  { %2158 = vmatprep.subr.bf16.mxu0 %v2438_v2 }
 0x49b   :  { %2159 = vmatpush3.bf16.msra.mxu0 %v2538_v10 }
 0x49c   :  { %2160 = vmatprep.subr.bf16.mxu0 %v2438_v2 }
 0x49f   :  { %2161 = vmatpush3.bf16.msra.mxu0 %v2552_v14 }
 0x4a0   :  { %2162 = vmatprep.subr.bf16.mxu0 %v2438_v2 }
 0x4a3   :  { %2163 = vmatpush3.bf16.msra.mxu0 %v2564_v18 }
 0x4a4   :  { %2208 = vmatprep.subr.bf16.mxu0 %v2438_v2 }
 0x4a6   :  { %2165 = vmatmul.mubr.bf16.vlgmr.msra.gmra.mrb[36].mxu0 %v703_v22 }
 0x4a7   :  { %2209 = vmatpush3.bf16.msra.mxu0 %v217_v40  ;;  %2210 = vmatprep.mubr.msk.bf16.mxu0 %vm2439_vm2, %v2438_v2 }
 0x4a8   :  { %2214 = vmatprep.subr.bf16.mxu0 %v2438_v2 }
 0x559   :  { %v689_v23 = vpop.f32.mrb[32].mxu0 }
 0x55a   :  { %v690_v24 = vadd.f32 %v689_v23, %v2699_v26  ;;  %v2146_v25 = vpop.f32.mrb[33].mxu0 }
 0x55b   :  { %v692_v27 = vpop.f32.mrb[34].mxu0 }
 0x55c   :  { %695 = vst [vmem:[#allocation2 + $0x1] sm:$0x1] %v690_v24  ;;  %v2147_v30 = vpop.f32.mrb[35].mxu0 }
 0x579   :  { %v738_v31 = vpop.f32.mrb[36].mxu0 }
 0x57a   :  { %v2166_v32 = vpop.f32.mrb[37].mxu0  ;;  %v792_v34 = vpack.c.bf16 %v738_v31, %v738_v31 }
 0x57b   :  { %v741_v33 = vpop.f32.mrb[38].mxu0 }
 0x57c   :  { %v745_v28 = vpack.c.bf16 %v741_v33, %v738_v31  ;;  %v2167_v29 = vpop.f32.mrb[39].mxu0  ;;  %v795_v58 = vshrl.u32 %v792_v34, 16 }
 0x57e   :  { %2171 = vmatmul.mubr.msk.bf16.vlgmr.msra.gmra.mrb[12].mxu1 %vm352_vm3, %v745_v28  ;;  %v797_v60 = vrot.slane %v795_v58, 1 }
 0x57f   :  { %2176 = vmatprep.mubr.msk.bf16.mxu1 %vm2439_vm2, %v2438_v2 }
 0x651   :  { %v783_v37 = vpop.f32.mrb[12].mxu1 }
 0x652   :  { %v784_v39 = vadd.f32 %v2654_v57, %v783_v37  ;;  %v2172_v40 = vpop.f32.mrb[13].mxu1 }
 0x653   :  { %v786_v35 = vpop.f32.mrb[14].mxu1 }
 0x654   :  { %v787_v36 = vadd.f32 %v2654_v57, %v786_v35  ;;  %v2173_v38 = vpop.f32.mrb[15].mxu1  ;;  %v790_v41 = vmax.f32 %v784_v39, 0.0 }
 0x656   :  { %v791_v42 = vmax.f32 %v787_v36, 0.0 }
 0x658   :  { %v793_v59 = vpack.c.bf16 %v791_v42, %v790_v41  ;;  %v1893_v42 = vld [vmem:[%s2990_s0 + $0x4] ss:$0 sm:$0xff] }
 0x659   :  { %v1081_v58 = vmul.f32 %v2544_v12, %v1893_v42 }
 0x65a   :  { %2175 = vmatpush3.bf16.msra.mxu1 %v793_v59  ;;  %v1082_v59 = vmul.f32 %v2546_v13, %v1893_v42 }
 0x65b   :  { %2180 = vmatprep.subr.bf16.mxu1 %v2438_v2 }
 0x65d   :  { %2177 = vmatmul.mubr.msk.bf16.vlgmr.msra.gmra.mrb[16].mxu1 %vm352_vm3, %v797_v60  ;;  %v1083_v60 = vpack.c.bf16 %v1082_v59, %v1081_v58 }
 0x65e   :  { %2181 = vmatpush3.bf16.msra.mxu1 %v2640_v55  ;;  %2184 = vmatprep.mubr.msk.bf16.mxu1 %vm2439_vm2, %v2438_v2 }
 0x65f   :  { %2182 = vmatprep.subr.bf16.mxu1 %v2438_v2 }
 0x662   :  { %2183 = vmatpush3.bf16.msra.mxu1 %v2646_v56 }
 0x663   :  { %2188 = vmatprep.subr.bf16.mxu1 %v2438_v2 }
 0x730   :  { %v835_v61 = vpop.f32.mrb[16].mxu1 }
 0x731   :  { %v841_v62 = vpack.c.bf16 %v835_v61, %v835_v61  ;;  %v2178_v63 = vpop.f32.mrb[17].mxu1 }
 0x732   :  { %v838_v0 = vpop.f32.mrb[18].mxu1 }
 0x733   :  { %v2179_v1 = vpop.f32.mrb[19].mxu1  ;;  %2185 = vmatmul.mubr.msk.bf16.vlgmr.msra.gmra.mrb[20].mxu1 %vm461_vm4, %v841_v62 }
 0x734   :  { %2189 = vmatpush3.bf16.msra.mxu1 %v2493_v3  ;;  %2204 = vmatprep.mubr.msk.bf16.mxu1 %vm2439_vm2, %v2438_v2 }
 0x735   :  { %2190 = vmatprep.subr.bf16.mxu1 %v2438_v2 }
 0x738   :  { %2191 = vmatpush3.bf16.msra.mxu1 %v2508_v6 }
 0x739   :  { %2192 = vmatprep.subr.bf16.mxu1 %v2438_v2 }
 0x73c   :  { %2193 = vmatpush3.bf16.msra.mxu1 %v2517_v7 }
 0x73d   :  { %2194 = vmatprep.subr.bf16.mxu1 %v2438_v2 }
 0x740   :  { %2195 = vmatpush3.bf16.msra.mxu1 %v2524_v8 }
 0x741   :  { %2196 = vmatprep.subr.bf16.mxu1 %v2438_v2 }
 0x744   :  { %2197 = vmatpush3.bf16.msra.mxu1 %v2530_v9 }
 0x745   :  { %2198 = vmatprep.subr.bf16.mxu1 %v2438_v2 }
 0x748   :  { %2199 = vmatpush3.bf16.msra.mxu1 %v2538_v10 }
 0x749   :  { %2200 = vmatprep.subr.bf16.mxu1 %v2438_v2 }
 0x74c   :  { %2201 = vmatpush3.bf16.msra.mxu1 %v2552_v14 }
 0x74d   :  { %2202 = vmatprep.subr.bf16.mxu1 %v2438_v2 }
 0x750   :  { %2203 = vmatpush3.bf16.msra.mxu1 %v2564_v18 }
 0x751   :  { %2248 = vmatprep.subr.bf16.mxu1 %v2438_v2 }
 0x753   :  { %2205 = vmatmul.mubr.bf16.vlgmr.msra.gmra.mrb[24].mxu1 %v893_v15 }
 0x754   :  { %2249 = vmatpush3.bf16.msra.mxu1 %v218_v48  ;;  %2250 = vmatprep.mubr.msk.bf16.mxu1 %vm2439_vm2, %v2438_v2 }
 0x755   :  { %2254 = vmatprep.subr.bf16.mxu1 %v2438_v2 }
 0x806   :  { %v879_v16 = vpop.f32.mrb[20].mxu1 }
 0x807   :  { %v880_v17 = vadd.f32 %v879_v16, %v2699_v26  ;;  %v2186_v19 = vpop.f32.mrb[21].mxu1 }
 0x808   :  { %v882_v20 = vpop.f32.mrb[22].mxu1 }
 0x809   :  { %885 = vst [vmem:[#allocation2 + $0x2] sm:$0x1] %v880_v17  ;;  %v2187_v21 = vpop.f32.mrb[23].mxu1 }
 0x826   :  { %v928_v22 = vpop.f32.mrb[24].mxu1 }
 0x827   :  { %v2206_v23 = vpop.f32.mrb[25].mxu1  ;;  %v982_v30 = vpack.c.bf16 %v928_v22, %v928_v22 }
 0x828   :  { %v931_v24 = vpop.f32.mrb[26].mxu1 }
 0x829   :  { %v935_v25 = vpack.c.bf16 %v931_v24, %v928_v22  ;;  %v2207_v27 = vpop.f32.mrb[27].mxu1  ;;  %v985_v37 = vshrl.u32 %v982_v30, 16 }
 0x82b   :  { %2211 = vmatmul.mubr.msk.bf16.vlgmr.msra.gmra.mrb[40].mxu0 %vm352_vm3, %v935_v25  ;;  %v987_v40 = vrot.slane %v985_v37, 1 }
 0x82c   :  { %2216 = vmatprep.mubr.msk.bf16.mxu0 %vm2439_vm2, %v2438_v2 }
 0x8fe   :  { %v973_v44 = vpop.f32.mrb[40].mxu0 }
 0x8ff   :  { %v974_v47 = vadd.f32 %v2654_v57, %v973_v44  ;;  %v2212_v48 = vpop.f32.mrb[41].mxu0 }
 0x900   :  { %v976_v31 = vpop.f32.mrb[42].mxu0 }
 0x901   :  { %v977_v32 = vadd.f32 %v2654_v57, %v976_v31  ;;  %v2213_v33 = vpop.f32.mrb[43].mxu0  ;;  %v980_v28 = vmax.f32 %v974_v47, 0.0 }
 0x903   :  { %v981_v29 = vmax.f32 %v977_v32, 0.0  ;;  %v1897_v32 = vld [vmem:[%s2990_s0 + $0x5] ss:$0 sm:$0xff] }
 0x904   :  { %v1271_v33 = vmul.f32 %v2544_v12, %v1897_v32 }
 0x905   :  { %v983_v39 = vpack.c.bf16 %v981_v29, %v980_v28  ;;  %v1272_v28 = vmul.f32 %v2546_v13, %v1897_v32 }
 0x907   :  { %2215 = vmatpush3.bf16.msra.mxu0 %v983_v39  ;;  %v1273_v29 = vpack.c.bf16 %v1272_v28, %v1271_v33 }
 0x908   :  { %2220 = vmatprep.subr.bf16.mxu0 %v2438_v2 }
 0x90a   :  { %2217 = vmatmul.mubr.msk.bf16.vlgmr.msra.gmra.mrb[44].mxu0 %vm352_vm3, %v987_v40 }
 0x90b   :  { %2221 = vmatpush3.bf16.msra.mxu0 %v2640_v55  ;;  %2224 = vmatprep.mubr.msk.bf16.mxu0 %vm2439_vm2, %v2438_v2 }
 0x90c   :  { %2222 = vmatprep.subr.bf16.mxu0 %v2438_v2 }
 0x90f   :  { %2223 = vmatpush3.bf16.msra.mxu0 %v2646_v56 }
 0x910   :  { %2228 = vmatprep.subr.bf16.mxu0 %v2438_v2 }
 0x9dd   :  { %v1025_v34 = vpop.f32.mrb[44].mxu0 }
 0x9de   :  { %v1031_v35 = vpack.c.bf16 %v1025_v34, %v1025_v34  ;;  %v2218_v36 = vpop.f32.mrb[45].mxu0 }
 0x9df   :  { %v1028_v38 = vpop.f32.mrb[46].mxu0 }
 0x9e0   :  { %v2219_v41 = vpop.f32.mrb[47].mxu0  ;;  %2225 = vmatmul.mubr.msk.bf16.vlgmr.msra.gmra.mrb[48].mxu0 %vm461_vm4, %v1031_v35 }
 0x9e1   :  { %2229 = vmatpush3.bf16.msra.mxu0 %v2493_v3  ;;  %2244 = vmatprep.mubr.msk.bf16.mxu0 %vm2439_vm2, %v2438_v2 }
 0x9e2   :  { %2230 = vmatprep.subr.bf16.mxu0 %v2438_v2 }
 0x9e5   :  { %2231 = vmatpush3.bf16.msra.mxu0 %v2508_v6 }
 0x9e6   :  { %2232 = vmatprep.subr.bf16.mxu0 %v2438_v2 }
 0x9e9   :  { %2233 = vmatpush3.bf16.msra.mxu0 %v2517_v7 }
 0x9ea   :  { %2234 = vmatprep.subr.bf16.mxu0 %v2438_v2 }
 0x9ed   :  { %2235 = vmatpush3.bf16.msra.mxu0 %v2524_v8 }
 0x9ee   :  { %2236 = vmatprep.subr.bf16.mxu0 %v2438_v2 }
 0x9f1   :  { %2237 = vmatpush3.bf16.msra.mxu0 %v2530_v9 }
 0x9f2   :  { %2238 = vmatprep.subr.bf16.mxu0 %v2438_v2 }
 0x9f5   :  { %2239 = vmatpush3.bf16.msra.mxu0 %v2538_v10 }
 0x9f6   :  { %2240 = vmatprep.subr.bf16.mxu0 %v2438_v2 }
 0x9f9   :  { %2241 = vmatpush3.bf16.msra.mxu0 %v2552_v14 }
 0x9fa   :  { %2242 = vmatprep.subr.bf16.mxu0 %v2438_v2 }
 0x9fd   :  { %2243 = vmatpush3.bf16.msra.mxu0 %v2564_v18 }
 0x9fe   :  { %2288 = vmatprep.subr.bf16.mxu0 %v2438_v2 }
 0xa00   :  { %2245 = vmatmul.mubr.bf16.vlgmr.msra.gmra.mrb[52].mxu0 %v1083_v60 }
 0xa01   :  { %2289 = vmatpush3.bf16.msra.mxu0 %v219_v46  ;;  %2290 = vmatprep.mubr.msk.bf16.mxu0 %vm2439_vm2, %v2438_v2 }
 0xa02   :  { %2294 = vmatprep.subr.bf16.mxu0 %v2438_v2 }
 0xab3   :  { %v1069_v61 = vpop.f32.mrb[48].mxu0 }
 0xab4   :  { %v1070_v62 = vadd.f32 %v1069_v61, %v2699_v26  ;;  %v2226_v63 = vpop.f32.mrb[49].mxu0 }
 0xab5   :  { %v1072_v0 = vpop.f32.mrb[50].mxu0 }
 0xab6   :  { %1075 = vst [vmem:[#allocation2 + $0x3] sm:$0x1] %v1070_v62  ;;  %v2227_v1 = vpop.f32.mrb[51].mxu0 }
 0xad3   :  { %v1118_v4 = vpop.f32.mrb[52].mxu0 }
 0xad4   :  { %v2246_v5 = vpop.f32.mrb[53].mxu0  ;;  %v1172_v17 = vpack.c.bf16 %v1118_v4, %v1118_v4 }
 0xad5   :  { %v1121_v11 = vpop.f32.mrb[54].mxu0 }
 0xad6   :  { %v1125_v15 = vpack.c.bf16 %v1121_v11, %v1118_v4  ;;  %v2247_v16 = vpop.f32.mrb[55].mxu0  ;;  %v1175_v24 = vshrl.u32 %v1172_v17, 16 }
 0xad8   :  { %2251 = vmatmul.mubr.msk.bf16.vlgmr.msra.gmra.mrb[28].mxu1 %vm352_vm3, %v1125_v15  ;;  %v1177_v27 = vrot.slane %v1175_v24, 1 }
 0xad9   :  { %2256 = vmatprep.mubr.msk.bf16.mxu1 %vm2439_vm2, %v2438_v2 }
 0xbab   :  { %v1163_v43 = vpop.f32.mrb[28].mxu1 }
 0xbac   :  { %v1164_v45 = vadd.f32 %v2654_v57, %v1163_v43  ;;  %v2252_v46 = vpop.f32.mrb[29].mxu1 }
 0xbad   :  { %v1166_v19 = vpop.f32.mrb[30].mxu1 }
 0xbae   :  { %v1167_v20 = vadd.f32 %v2654_v57, %v1166_v19  ;;  %v2253_v21 = vpop.f32.mrb[31].mxu1  ;;  %v1170_v22 = vmax.f32 %v1164_v45, 0.0 }
 0xbb0   :  { %v1171_v23 = vmax.f32 %v1167_v20, 0.0 }
 0xbb2   :  { %v1173_v25 = vpack.c.bf16 %v1171_v23, %v1170_v22 }
 0xbb4   :  { %2255 = vmatpush3.bf16.msra.mxu1 %v1173_v25 }
 0xbb5   :  { %2260 = vmatprep.subr.bf16.mxu1 %v2438_v2 }
 0xbb7   :  { %2257 = vmatmul.mubr.msk.bf16.vlgmr.msra.gmra.mrb[32].mxu1 %vm352_vm3, %v1177_v27 }
 0xbb8   :  { %2261 = vmatpush3.bf16.msra.mxu1 %v2640_v55  ;;  %2264 = vmatprep.mubr.msk.bf16.mxu1 %vm2439_vm2, %v2438_v2 }
 0xbb9   :  { %2262 = vmatprep.subr.bf16.mxu1 %v2438_v2 }
 0xbbc   :  { %2263 = vmatpush3.bf16.msra.mxu1 %v2646_v56 }
 0xbbd   :  { %2268 = vmatprep.subr.bf16.mxu1 %v2438_v2 }
 0xc8a   :  { %v1215_v44 = vpop.f32.mrb[32].mxu1 }
 0xc8b   :  { %v1221_v47 = vpack.c.bf16 %v1215_v44, %v1215_v44  ;;  %v2258_v48 = vpop.f32.mrb[33].mxu1 }
 0xc8c   :  { %v1218_v30 = vpop.f32.mrb[34].mxu1 }
 0xc8d   :  { %v2259_v31 = vpop.f32.mrb[35].mxu1  ;;  %2265 = vmatmul.mubr.msk.bf16.vlgmr.msra.gmra.mrb[36].mxu1 %vm461_vm4, %v1221_v47 }
 0xc8e   :  { %2269 = vmatpush3.bf16.msra.mxu1 %v2493_v3  ;;  %2284 = vmatprep.mubr.msk.bf16.mxu1 %vm2439_vm2, %v2438_v2 }
 0xc8f   :  { %2270 = vmatprep.subr.bf16.mxu1 %v2438_v2 }
 0xc92   :  { %2271 = vmatpush3.bf16.msra.mxu1 %v2508_v6 }
 0xc93   :  { %2272 = vmatprep.subr.bf16.mxu1 %v2438_v2 }
 0xc96   :  { %2273 = vmatpush3.bf16.msra.mxu1 %v2517_v7 }
 0xc97   :  { %2274 = vmatprep.subr.bf16.mxu1 %v2438_v2 }
 0xc9a   :  { %2275 = vmatpush3.bf16.msra.mxu1 %v2524_v8 }
 0xc9b   :  { %2276 = vmatprep.subr.bf16.mxu1 %v2438_v2 }
 0xc9e   :  { %2277 = vmatpush3.bf16.msra.mxu1 %v2530_v9 }
 0xc9f   :  { %2278 = vmatprep.subr.bf16.mxu1 %v2438_v2 }
 0xca2   :  { %2279 = vmatpush3.bf16.msra.mxu1 %v2538_v10 }
 0xca3   :  { %2280 = vmatprep.subr.bf16.mxu1 %v2438_v2 }
 0xca6   :  { %2281 = vmatpush3.bf16.msra.mxu1 %v2552_v14 }
 0xca7   :  { %2282 = vmatprep.subr.bf16.mxu1 %v2438_v2 }
 0xcaa   :  { %2283 = vmatpush3.bf16.msra.mxu1 %v2564_v18 }
 0xcab   :  { %2328 = vmatprep.subr.bf16.mxu1 %v2438_v2 }
 0xcad   :  { %2285 = vmatmul.mubr.bf16.vlgmr.msra.gmra.mrb[40].mxu1 %v1273_v29 }
 0xcae   :  { %2329 = vmatpush3.bf16.msra.mxu1 %v220_v54  ;;  %2330 = vmatprep.mubr.msk.bf16.mxu1 %vm2439_vm2, %v2438_v2 }
 0xcaf   :  { %2334 = vmatprep.subr.bf16.mxu1 %v2438_v2 }
 0xd60   :  { %v1259_v37 = vpop.f32.mrb[36].mxu1 }
 0xd61   :  { %v1260_v39 = vadd.f32 %v1259_v37, %v2699_v26  ;;  %v2266_v40 = vpop.f32.mrb[37].mxu1 }
 0xd62   :  { %v1262_v34 = vpop.f32.mrb[38].mxu1 }
 0xd63   :  { %1265 = vst [vmem:[#allocation2 + $0x4] sm:$0x1] %v1260_v39  ;;  %v2267_v35 = vpop.f32.mrb[39].mxu1 }
 0xd80   :  { %v1308_v36 = vpop.f32.mrb[40].mxu1 }
 0xd81   :  { %v2286_v38 = vpop.f32.mrb[41].mxu1  ;;  %v1362_v59 = vpack.c.bf16 %v1308_v36, %v1308_v36 }
 0xd82   :  { %v1311_v41 = vpop.f32.mrb[42].mxu1  ;;  %v2411_v38 = vld [vmem:[%s2993_s3 + $0x8] sm:$0xff]  }
 0xd83   :  { %v1315_v42 = vpack.c.bf16 %v1311_v41, %v1308_v36  ;;  %v2287_v58 = vpop.f32.mrb[43].mxu1  ;;  %v1365_v1 = vshrl.u32 %v1362_v59, 16  ;;  %v2410_v36 = vld [vmem:[%s2993_s3] sm:$0xff]   ;;  %v2412_v41 = vld [vmem:[%s2993_s3 + $0x10] sm:$0xff]  }
 0xd84   :  { %v1905_v58 = vld [vmem:[%s2990_s0 + $0x7] ss:$0 sm:$0xff] }
 0xd85   :  { %2291 = vmatmul.mubr.msk.bf16.vlgmr.msra.gmra.mrb[56].mxu0 %vm352_vm3, %v1315_v42  ;;  %v1367_v5 = vrot.slane %v1365_v1, 1  ;;  %v2413_v42 = vld [vmem:[%s2993_s3 + $0x18] sm:$0xff]  }
 0xd86   :  { %2296 = vmatprep.mubr.msk.bf16.mxu0 %vm2439_vm2, %v2438_v2 }
 0xe58   :  { %v1353_v50 = vpop.f32.mrb[56].mxu0 }
 0xe59   :  { %v1354_v53 = vadd.f32 %v2654_v57, %v1353_v50  ;;  %v2292_v54 = vpop.f32.mrb[57].mxu0  ;;  %v1651_v50 = vmul.f32 %v2544_v12, %v1905_v58 }
 0xe5a   :  { %v1356_v60 = vpop.f32.mrb[58].mxu0 }
 0xe5b   :  { %v1357_v61 = vadd.f32 %v2654_v57, %v1356_v60  ;;  %v2293_v62 = vpop.f32.mrb[59].mxu0  ;;  %v1360_v63 = vmax.f32 %v1354_v53, 0.0  ;;  %v1652_v53 = vmul.f32 %v2546_v13, %v1905_v58 }
 0xe5d   :  { %v1361_v0 = vmax.f32 %v1357_v61, 0.0  ;;  %v1653_v54 = vpack.c.bf16 %v1652_v53, %v1651_v50 }
 0xe5f   :  { %v1363_v4 = vpack.c.bf16 %v1361_v0, %v1360_v63 }
 0xe61   :  { %2295 = vmatpush3.bf16.msra.mxu0 %v1363_v4 }
 0xe62   :  { %2300 = vmatprep.subr.bf16.mxu0 %v2438_v2 }
 0xe64   :  { %2297 = vmatmul.mubr.msk.bf16.vlgmr.msra.gmra.mrb[60].mxu0 %vm352_vm3, %v1367_v5 }
 0xe65   :  { %2301 = vmatpush3.bf16.msra.mxu0 %v2640_v55  ;;  %2304 = vmatprep.mubr.msk.bf16.mxu0 %vm2439_vm2, %v2438_v2 }
 0xe66   :  { %2302 = vmatprep.subr.bf16.mxu0 %v2438_v2 }
 0xe69   :  { %2303 = vmatpush3.bf16.msra.mxu0 %v2646_v56 }
 0xe6a   :  { %2308 = vmatprep.subr.bf16.mxu0 %v2438_v2 }
 0xf37   :  { %v1405_v11 = vpop.f32.mrb[60].mxu0 }
 0xf38   :  { %v1411_v15 = vpack.c.bf16 %v1405_v11, %v1405_v11  ;;  %v2298_v16 = vpop.f32.mrb[61].mxu0 }
 0xf39   :  { %v1408_v43 = vpop.f32.mrb[62].mxu0 }
 0xf3a   :  { %v2299_v45 = vpop.f32.mrb[63].mxu0  ;;  %2305 = vmatmul.mubr.msk.bf16.vlgmr.msra.gmra.mrb[64].mxu0 %vm461_vm4, %v1411_v15 }
 0xf3b   :  { %2309 = vmatpush3.bf16.msra.mxu0 %v2493_v3  ;;  %2324 = vmatprep.mubr.msk.bf16.mxu0 %vm2439_vm2, %v2438_v2  ;;  %v1901_v3 = vld [vmem:[%s2990_s0 + $0x6] ss:$0 sm:$0xff]  ;;  %s2440_s0 = smov [#allocation2]  }
 0xf3c   :  { %2310 = vmatprep.subr.bf16.mxu0 %v2438_v2  ;;  %s1842_s3 = sshll.u32 %s2440_s0, 4  ;;  %s1843_s3 = int_to_ptr.vmem [resolvable:$true] %s1842_s3 }
 0xf3d   :  { %s2414_s19 = scalar_lea.vmem %s1843_s3, 128  ;;  %p2419_p1 = scmp.lt.s32.totalorder %s1843_s3, %s1843_s3 }
 0xf3e   :  { %p2415_p0 = scmp.ne.s32.totalorder %s1843_s3, %s2414_s19  ;;  %p2420_p2 = scmp.lt.s32.totalorder %s2414_s19, %s2414_s19 }
 0xf3f   :  { %2311 = vmatpush3.bf16.msra.mxu0 %v2508_v6  ;;  %v1461_v6 = vmul.f32 %v2544_v12, %v1901_v3 }
 0xf40   :  { %2312 = vmatprep.subr.bf16.mxu0 %v2438_v2  ;;  %p2421_p3 = por %p2420_p2, %p2419_p1 }
 0xf42   :  { %p2422_p4 = pnand %p2421_p3, %p2415_p0 }
 0xf43   :  { %2313 = vmatpush3.bf16.msra.mxu0 %v2517_v7  ;;  %v1462_v7 = vmul.f32 %v2546_v13, %v1901_v3 }
 0xf44   :  { %2314 = vmatprep.subr.bf16.mxu0 %v2438_v2 }
 0xf47   :  { %2315 = vmatpush3.bf16.msra.mxu0 %v2524_v8  ;;  %v1463_v8 = vpack.c.bf16 %v1462_v7, %v1461_v6 }
 0xf48   :  { %2316 = vmatprep.subr.bf16.mxu0 %v2438_v2 }
 0xf4b   :  { %2317 = vmatpush3.bf16.msra.mxu0 %v2530_v9 }
 0xf4c   :  { %2318 = vmatprep.subr.bf16.mxu0 %v2438_v2 }
 0xf4f   :  { %2319 = vmatpush3.bf16.msra.mxu0 %v2538_v10 }
 0xf50   :  { %2320 = vmatprep.subr.bf16.mxu0 %v2438_v2 }
 0xf53   :  { %2321 = vmatpush3.bf16.msra.mxu0 %v2552_v14 }
 0xf54   :  { %2322 = vmatprep.subr.bf16.mxu0 %v2438_v2 }
 0xf57   :  { %2323 = vmatpush3.bf16.msra.mxu0 %v2564_v18 }
 0xf58   :  { %2368 = vmatprep.subr.bf16.mxu0 %v2438_v2 }
 0xf5a   :  { %2325 = vmatmul.mubr.bf16.vlgmr.msra.gmra.mrb[68].mxu0 %v1463_v8 }
 0xf5b   :  { %2369 = vmatpush3.bf16.msra.mxu0 %v221_v52  ;;  %2370 = vmatprep.mubr.msk.bf16.mxu0 %vm2439_vm2, %v2438_v2 }
 0xf5c   :  { %2374 = vmatprep.subr.bf16.mxu0 %v2438_v2 }
0x100d   :  { %v1449_v46 = vpop.f32.mrb[64].mxu0 }
0x100e   :  { %v1450_v17 = vadd.f32 %v1449_v46, %v2699_v26  ;;  %v2306_v19 = vpop.f32.mrb[65].mxu0 }
0x100f   :  { %v1452_v20 = vpop.f32.mrb[66].mxu0 }
0x1010   :  { %1455 = vst [vmem:[#allocation2 + $0x5] sm:$0x1] %v1450_v17  ;;  %v2307_v21 = vpop.f32.mrb[67].mxu0 }
0x102d   :  { %v1498_v22 = vpop.f32.mrb[68].mxu0 }
0x102e   :  { %v2326_v23 = vpop.f32.mrb[69].mxu0  ;;  %v1552_v44 = vpack.c.bf16 %v1498_v22, %v1498_v22 }
0x102f   :  { %v1501_v24 = vpop.f32.mrb[70].mxu0 }
0x1030   :  { %v1505_v25 = vpack.c.bf16 %v1501_v24, %v1498_v22  ;;  %v2327_v27 = vpop.f32.mrb[71].mxu0  ;;  %v1555_v33 = vshrl.u32 %v1552_v44, 16 }
0x1032   :  { %2331 = vmatmul.mubr.msk.bf16.vlgmr.msra.gmra.mrb[44].mxu1 %vm352_vm3, %v1505_v25  ;;  %v1557_v29 = vrot.slane %v1555_v33, 1 }
0x1033   :  { %2336 = vmatprep.mubr.msk.bf16.mxu1 %vm2439_vm2, %v2438_v2 }
0x1105   :  { %v1543_v49 = vpop.f32.mrb[44].mxu1 }
0x1106   :  { %v1544_v51 = vadd.f32 %v2654_v57, %v1543_v49  ;;  %v2332_v52 = vpop.f32.mrb[45].mxu1 }
0x1107   :  { %v1546_v47 = vpop.f32.mrb[46].mxu1 }
0x1108   :  { %v1547_v48 = vadd.f32 %v2654_v57, %v1546_v47  ;;  %v2333_v30 = vpop.f32.mrb[47].mxu1  ;;  %v1550_v31 = vmax.f32 %v1544_v51, 0.0 }
0x110a   :  { %v1551_v32 = vmax.f32 %v1547_v48, 0.0 }
0x110c   :  { %v1553_v28 = vpack.c.bf16 %v1551_v32, %v1550_v31 }
0x110e   :  { %2335 = vmatpush3.bf16.msra.mxu1 %v1553_v28 }
0x110f   :  { %2340 = vmatprep.subr.bf16.mxu1 %v2438_v2 }
0x1111   :  { %2337 = vmatmul.mubr.msk.bf16.vlgmr.msra.gmra.mrb[48].mxu1 %vm352_vm3, %v1557_v29 }
0x1112   :  { %2341 = vmatpush3.bf16.msra.mxu1 %v2640_v55  ;;  %2344 = vmatprep.mubr.msk.bf16.mxu1 %vm2439_vm2, %v2438_v2 }
0x1113   :  { %2342 = vmatprep.subr.bf16.mxu1 %v2438_v2 }
0x1116   :  { %2343 = vmatpush3.bf16.msra.mxu1 %v2646_v56 }
0x1117   :  { %2348 = vmatprep.subr.bf16.mxu1 %v2438_v2 }
0x11e4   :  { %v1595_v37 = vpop.f32.mrb[48].mxu1 }
0x11e5   :  { %v1601_v39 = vpack.c.bf16 %v1595_v37, %v1595_v37  ;;  %v2338_v40 = vpop.f32.mrb[49].mxu1 }
0x11e6   :  { %v1598_v34 = vpop.f32.mrb[50].mxu1 }
0x11e7   :  { %v2339_v35 = vpop.f32.mrb[51].mxu1  ;;  %2345 = vmatmul.mubr.msk.bf16.vlgmr.msra.gmra.mrb[52].mxu1 %vm461_vm4, %v1601_v39 }
0x11e8   :  { %2349 = vmatpush3.bf16.msra.mxu1 %v2410_v36  ;;  %2364 = vmatprep.mubr.msk.bf16.mxu1 %vm2439_vm2, %v2438_v2 }
0x11e9   :  { %2350 = vmatprep.subr.bf16.mxu1 %v2438_v2 }
0x11ec   :  { %2351 = vmatpush3.bf16.msra.mxu1 %v2411_v38 }
0x11ed   :  { %2352 = vmatprep.subr.bf16.mxu1 %v2438_v2 }
0x11f0   :  { %2353 = vmatpush3.bf16.msra.mxu1 %v2412_v41 }
0x11f1   :  { %2354 = vmatprep.subr.bf16.mxu1 %v2438_v2 }
0x11f4   :  { %2355 = vmatpush3.bf16.msra.mxu1 %v2413_v42 }
0x11f5   :  { %2356 = vmatprep.subr.bf16.mxu1 %v2438_v2 }
0x11f8   :  { %2357 = vmatpush3.bf16.msra.mxu1 %v2530_v9 }
0x11f9   :  { %2358 = vmatprep.subr.bf16.mxu1 %v2438_v2 }
0x11fc   :  { %2359 = vmatpush3.bf16.msra.mxu1 %v2538_v10 }
0x11fd   :  { %2360 = vmatprep.subr.bf16.mxu1 %v2438_v2 }
0x1200   :  { %2361 = vmatpush3.bf16.msra.mxu1 %v2552_v14 }
0x1201   :  { %2362 = vmatprep.subr.bf16.mxu1 %v2438_v2 }
0x1204   :  { %2363 = vmatpush3.bf16.msra.mxu1 %v2564_v18 }
0x1207   :  { %2365 = vmatmul.mubr.bf16.vlgmr.msra.gmra.mrb[56].mxu1 %v1653_v54 }
0x12ba   :  { %v1639_v9 = vpop.f32.mrb[52].mxu1 }
0x12bb   :  { %v1640_v10 = vadd.f32 %v1639_v9, %v2699_v26  ;;  %v2346_v59 = vpop.f32.mrb[53].mxu1 }
0x12bc   :  { %v1642_v60 = vpop.f32.mrb[54].mxu1 }
0x12bd   :  { %1645 = vst [vmem:[#allocation2 + $0x6] sm:$0x1] %v1640_v10  ;;  %v2347_v61 = vpop.f32.mrb[55].mxu1 }
0x12da   :  { %v1688_v62 = vpop.f32.mrb[56].mxu1 }
0x12db   :  { %v2366_v63 = vpop.f32.mrb[57].mxu1  ;;  %v1742_v4 = vpack.c.bf16 %v1688_v62, %v1688_v62 }
0x12dc   :  { %v1691_v12 = vpop.f32.mrb[58].mxu1 }
0x12dd   :  { %v1695_v0 = vpack.c.bf16 %v1691_v12, %v1688_v62  ;;  %v2367_v13 = vpop.f32.mrb[59].mxu1  ;;  %v1745_v45 = vshrl.u32 %v1742_v4, 16 }
0x12df   :  { %2371 = vmatmul.mubr.msk.bf16.vlgmr.msra.gmra.mrb[72].mxu0 %vm352_vm3, %v1695_v0  ;;  %v1747_v6 = vrot.slane %v1745_v45, 1 }
0x12e0   :  { %2376 = vmatprep.mubr.msk.bf16.mxu0 %vm2439_vm2, %v2438_v2 }
0x13b2   :  { %v1733_v14 = vpop.f32.mrb[72].mxu0 }
0x13b3   :  { %v1734_v18 = vadd.f32 %v2654_v57, %v1733_v14  ;;  %v2372_v1 = vpop.f32.mrb[73].mxu0 }
0x13b4   :  { %v1736_v5 = vpop.f32.mrb[74].mxu0 }
0x13b5   :  { %v1737_v11 = vadd.f32 %v2654_v57, %v1736_v5  ;;  %v2373_v15 = vpop.f32.mrb[75].mxu0  ;;  %v1740_v16 = vmax.f32 %v1734_v18, 0.0 }
0x13b7   :  { %v1741_v43 = vmax.f32 %v1737_v11, 0.0 }
0x13b9   :  { %v1743_v3 = vpack.c.bf16 %v1741_v43, %v1740_v16 }
0x13bb   :  { %2375 = vmatpush3.bf16.msra.mxu0 %v1743_v3 }
0x13bc   :  { %2380 = vmatprep.subr.bf16.mxu0 %v2438_v2 }
0x13be   :  { %2377 = vmatmul.mubr.msk.bf16.vlgmr.msra.gmra.mrb[76].mxu0 %vm352_vm3, %v1747_v6 }
0x13bf   :  { %2381 = vmatpush3.bf16.msra.mxu0 %v2640_v55  ;;  %2384 = vmatprep.mubr.msk.bf16.mxu0 %vm2439_vm2, %v2438_v2 }
0x13c0   :  { %2382 = vmatprep.subr.bf16.mxu0 %v2438_v2 }
0x13c3   :  { %2383 = vmatpush3.bf16.msra.mxu0 %v2646_v56 }
0x1491   :  { %v1785_v57 = vpop.f32.mrb[76].mxu0 }
0x1492   :  { %v1791_v7 = vpack.c.bf16 %v1785_v57, %v1785_v57  ;;  %v2378_v8 = vpop.f32.mrb[77].mxu0 }
0x1493   :  { %v1788_v46 = vpop.f32.mrb[78].mxu0 }
0x1494   :  { %v2379_v17 = vpop.f32.mrb[79].mxu0  ;;  %2385 = vmatmul.mubr.msk.bf16.vlgmr.msra.gmra.mrb[80].mxu0 %vm461_vm4, %v1791_v7 }
0x1567   :  { %v1829_v19 = vpop.f32.mrb[80].mxu0 }
0x1568   :  { %v1830_v20 = vadd.f32 %v1829_v19, %v2699_v26  ;;  %v2386_v55 = vpop.f32.mrb[81].mxu0 }
0x1569   :  { %v1832_v21 = vpop.f32.mrb[82].mxu0 }
0x156a   :  { %1835 = vst [vmem:[#allocation2 + $0x7] sm:$0x1] %v1830_v20  ;;  %v2387_v22 = vpop.f32.mrb[83].mxu0 }
0x156b   :  { %2425 = shalt.err (!%p2422_p4)
}
0x156c   :  { %s2426_s22 = scalar_lea.hbm %s2998_s8, 128 }
0x156d   :  { %p2427_p5 = scmp.ne.s32.totalorder %s2998_s8, %s2426_s22  ;;  %p2430_p6 = scmp.lt.u32.totalorder %s2426_s22, %s2998_s8 }
0x156f   :  { %p2432_p7 = pnand %p2430_p6, %p2427_p5 }
0x1571   :  { %2435 = shalt.err (!%p2432_p7)
}
0x1572   :  { %1845 = dma.vmem_to_hbm [thread:$0]  %s1843_s3, 128, %s2998_s8, [#allocation3]  }
0x1573   :  { %2436 = dma.done.wait [#allocation3], 128  }
0x1574   :  { %2437 = vsyncadd [#allocation3], 4294967168 }
0x1575   :  { %1849 = vsyncpa [#allocation3], 1 }

</bundles_post_ra>
